<compile_context>
chip_gen: v7x
topology: tpu7x:2x2x1
jax: 0.10.0
libtpu: 0.0.40
codegen_flags: <defaults>
</compile_context>

<pallas_src>
import numpy as np
import jax
import jax.numpy as jnp
from jax import lax
from jax.experimental import pallas as pl
from jax.experimental.pallas import tpu as pltpu

BN_EPS = 1e-5


def _round_up(v, m):
    return ((v + m - 1) // m) * m


def _vmem_limit_bytes(per_step_bytes):
    # Generous headroom over the estimated per-grid-step footprint, but capped
    # well below v7x's 64 MiB physical VMEM (v5e/v6e have 128 MiB, so the cap
    # is safe on every generation).
    return int(min(max(3 * per_step_bytes + (4 << 20), 32 << 20), 48 << 20))


def _const_spec(shape, buffered):
    # Constant-index block (same tile every grid step).  When supported,
    # single-buffer it (no point double-buffering a block that never changes).
    zeros = (0,) * len(shape)
    index_map = lambda i: zeros
    if buffered:
        return pl.BlockSpec(shape, index_map, pipeline_mode=pl.Buffered(1))
    return pl.BlockSpec(shape, index_map)


# --------------------------------------------------------------------------
# Pallas kernel 1: concat_b(relu(bn_b(x_b))) @ W_stacked   (M-tiled, one dot)
# --------------------------------------------------------------------------

def _fused_bnrelu_mm_kernel(*refs):
    # refs = (x_0, sc_0, sh_0, ..., x_{B-1}, sc_{B-1}, sh_{B-1}, w_stacked, o)
    # x_b : (TM, C_b)  (bf16 or f32), sc/sh : (1, C_b) f32,
    # w_stacked : (sum_b C_b, Cout) bf16, o : (TM, Cout)
    o_ref, w_ref = refs[-1], refs[-2]
    nb = (len(refs) - 2) // 3
    acts = []
    for b in range(nb):
        x_ref, sc_ref, sh_ref = refs[3 * b:3 * b + 3]
        y = jnp.maximum(x_ref[...].astype(jnp.float32) * sc_ref[...] + sh_ref[...],
                        0.0)                                     # f32 VPU math
        acts.append(y)
    yk = acts[0] if nb == 1 else jnp.concatenate(acts, axis=-1)  # K-concat
    # Single long-K dot: cross-branch accumulation happens inside the MXU,
    # not via read-modify-write passes over the f32 output tile.
    o_ref[...] = jnp.dot(yk.astype(jnp.bfloat16), w_ref[...],
                         preferred_element_type=jnp.float32).astype(o_ref.dtype)


def fused_bn_relu_1x1(chunks, w_stacked, out_dtype=jnp.float32, tile_m=512):
    """chunks: list of (x2d (M, C_b), scale (C_b,), shift (C_b,)).
    w_stacked: (sum_b C_b, Cout) with rows ordered like the chunk list.
    Returns concat_b(relu(x_b * scale_b + shift_b)) @ w_stacked  -> (M, Cout).
    """
    m = chunks[0][0].shape[0]
    sum_c, cout = w_stacked.shape
    tm = min(tile_m, _round_up(m, 8))
    m_pad = _round_up(m, tm)

    def build(buffered):
        args, in_specs = [], []
        step_bytes = 0
        bytes_acc = sum_c * cout * 2 + m_pad * cout * jnp.dtype(out_dtype).itemsize
        for x2d, sc, sh in chunks:
            c = x2d.shape[1]
            xp = jnp.pad(x2d, ((0, m_pad - m), (0, 0))) if m_pad != m else x2d
            args += [xp, sc.reshape(1, c).astype(jnp.float32),
                     sh.reshape(1, c).astype(jnp.float32)]
            in_specs += [
                pl.BlockSpec((tm, c), lambda i: (i, 0)),   # activation: M-tiled
                _const_spec((1, c), buffered),             # scale
                _const_spec((1, c), buffered),             # shift
            ]
            step_bytes += 2 * tm * c * x2d.dtype.itemsize
            bytes_acc += xp.size * x2d.dtype.itemsize
        args.append(w_stacked.astype(jnp.bfloat16))
        in_specs.append(_const_spec((sum_c, cout), buffered))
        step_bytes += 2 * sum_c * cout * 2                       # weight (bf16)
        step_bytes += 2 * tm * cout * jnp.dtype(out_dtype).itemsize
        flops = 2 * m_pad * sum_c * cout

        call = pl.pallas_call(
            _fused_bnrelu_mm_kernel,
            out_shape=jax.ShapeDtypeStruct((m_pad, cout), out_dtype),
            grid_spec=pltpu.PrefetchScalarGridSpec(
                num_scalar_prefetch=0,
                grid=(m_pad // tm,),
                in_specs=in_specs,
                out_specs=pl.BlockSpec((tm, cout), lambda i: (i, 0)),
            ),
            compiler_params=pltpu.CompilerParams(
                dimension_semantics=("parallel",),
                vmem_limit_bytes=_vmem_limit_bytes(step_bytes)),
            cost_estimate=pl.CostEstimate(flops=int(flops), transcendentals=0,
                                          bytes_accessed=int(bytes_acc)),
        )
        return call, args

    try:                       # single-buffered constant blocks (preferred)
        call, args = build(True)
        out = call(*args)
    except Exception:          # fallback: default (double) buffering
        call, args = build(False)
        out = call(*args)
    return out[:m] if m_pad != m else out


# --------------------------------------------------------------------------
# Pallas kernel 2: process stage = (branch + prev) -> BN -> ReLU -> 3x3 conv
# --------------------------------------------------------------------------

def _process_kernel(br_ref, prev_ref, sc_ref, sh_ref, w_ref, o_ref,
                    pad_ref, kbuf_ref):
    # br   : (1, hb, wb, C)  upsampled branch (hb=wb=1 for the global-pool
    #                        branch: broadcast in-kernel, never in HBM)
    # prev : (1, H, W, C)    previous x_list entry (bf16)
    # sc/sh: (1, 1, 1, C)    folded BN of process_i (f32)
    # w    : (9*C, C) bf16   3x3 conv weights stacked tap-major along K
    # o    : (1, H, W, C)
    # pad_ref  : VMEM (H+2, W+2, C) f32  (zero halo, interior = activation)
    # kbuf_ref : VMEM (H*W, 9*C) bf16    im2col operand (kept out of vregs)
    H, W, C = o_ref.shape[1], o_ref.shape[2], o_ref.shape[3]

    y = jnp.maximum(
        (br_ref[0].astype(jnp.float32) + prev_ref[0].astype(jnp.float32))
        * sc_ref[0] + sh_ref[0], 0.0)

    # Zero only the 1-pixel halo; the interior is fully overwritten every step.
    pad_ref[0:1, :, :] = jnp.zeros((1, W + 2, C), jnp.float32)
    pad_ref[H + 1:H + 2, :, :] = jnp.zeros((1, W + 2, C), jnp.float32)
    pad_ref[1:H + 1, 0:1, :] = jnp.zeros((H, 1, C), jnp.float32)
    pad_ref[1:H + 1, W + 1:W + 2, :] = jnp.zeros((H, 1, C), jnp.float32)
    pad_ref[1:H + 1, 1:W + 1, :] = y

    # Pack the 9 shifted windows into one (H*W, 9*C) bf16 operand and issue a
    # SINGLE long-K MXU dot (accumulation over taps stays inside the MXU; no
    # f32 accumulator RMW passes).  Each window store is independent, so the
    # static unroll carries no accumulator live range.
    for ky in range(3):
        for kx in range(3):
            t = ky * 3 + kx
            win = pad_ref[ky:ky + H, kx:kx + W, :].reshape(H * W, C)
            kbuf_ref[:, t * C:(t + 1) * C] = win.astype(jnp.bfloat16)
    out = jnp.dot(kbuf_ref[...], w_ref[...], preferred_element_type=jnp.float32)
    o_ref[0] = out.reshape(H, W, C).astype(o_ref.dtype)


def process_stage(br, prev, scale, shift, w_kstack, out_dtype=jnp.bfloat16):
    # TODO(synk): for v7x (2 TCs, 64 MiB VMEM) a second, row-strip grid axis
    # with a 1-row halo would spread N=1 workloads across both cores; kept on
    # a per-batch grid here for lowering robustness.
    n, hb, wb, c = br.shape
    _, H, W, _ = prev.shape

    def build(buffered):
        step_bytes = (2 * (hb * wb * c) * br.dtype.itemsize
                      + 2 * (H * W * c) * prev.dtype.itemsize
                      + 2 * (H * W * c) * jnp.dtype(out_dtype).itemsize
                      + (H + 2) * (W + 2) * c * 4
                      + H * W * 9 * c * 2
                      + 2 * 9 * c * c * 2)
        flops = 2 * n * H * W * (9 * c) * c
        bytes_acc = (br.size * br.dtype.itemsize + prev.size * prev.dtype.itemsize
                     + 9 * c * c * 2
                     + n * H * W * c * jnp.dtype(out_dtype).itemsize)
        return pl.pallas_call(
            _process_kernel,
            out_shape=jax.ShapeDtypeStruct((n, H, W, c), out_dtype),
            grid_spec=pltpu.PrefetchScalarGridSpec(
                num_scalar_prefetch=0,
                grid=(n,),
                in_specs=[
                    pl.BlockSpec((1, hb, wb, c), lambda i: (i, 0, 0, 0)),
                    pl.BlockSpec((1, H, W, c), lambda i: (i, 0, 0, 0)),
                    _const_spec((1, 1, 1, c), buffered),
                    _const_spec((1, 1, 1, c), buffered),
                    _const_spec((9 * c, c), buffered),
                ],
                out_specs=pl.BlockSpec((1, H, W, c), lambda i: (i, 0, 0, 0)),
                scratch_shapes=[
                    pltpu.VMEM((H + 2, W + 2, c), jnp.float32),
                    pltpu.VMEM((H * W, 9 * c), jnp.bfloat16),
                ],
            ),
            compiler_params=pltpu.CompilerParams(
                dimension_semantics=("parallel",),
                vmem_limit_bytes=_vmem_limit_bytes(step_bytes)),
            cost_estimate=pl.CostEstimate(flops=int(flops), transcendentals=0,
                                          bytes_accessed=int(bytes_acc)),
        )

    args = (br, prev,
            scale.reshape(1, 1, 1, -1).astype(jnp.float32),
            shift.reshape(1, 1, 1, -1).astype(jnp.float32),
            w_kstack.astype(jnp.bfloat16))
    try:
        return build(True)(*args)
    except Exception:
        return build(False)(*args)


# --------------------------------------------------------------------------
# JAX glue (pooling, bilinear-resize weights, layout plumbing)
# --------------------------------------------------------------------------
# TODO(synk): AvgPool2d / AdaptiveAvgPool2d reductions and the bilinear resize
# stay in XLA glue; fusing the scale_i 1x1 conv + resize into process_stage
# needs an in-kernel middle-axis contraction / transpose and is left out here
# for lowering robustness.

def avg_pool_nhwc(x, k, s, p):
    # Matches PyTorch AvgPool2d(kernel_size=k, stride=s, padding=p) with the
    # default count_include_pad=True (divisor always k*k).
    xp = jnp.pad(x, ((0, 0), (p, p), (p, p), (0, 0)))
    summed = lax.reduce_window(xp, 0.0, lax.add,
                               (1, k, k, 1), (1, s, s, 1), 'VALID')
    return summed / float(k * k)


def _resize_matrix(n_out, n_in):
    # Row-interpolation matrix for PyTorch bilinear, align_corners=False.
    i = np.arange(n_out, dtype=np.float64)
    src = np.maximum((i + 0.5) * (n_in / n_out) - 0.5, 0.0)
    i0 = np.minimum(np.floor(src).astype(np.int64), n_in - 1)
    i1 = np.minimum(i0 + 1, n_in - 1)
    w1 = (src - i0).astype(np.float32)
    w0 = 1.0 - w1
    m = np.zeros((n_out, n_in), dtype=np.float32)
    m[np.arange(n_out), i0] += w0
    m[np.arange(n_out), i1] += w1
    return jnp.asarray(m)


def bilinear_resize_nhwc(x, H, W):
    _, h, w, _ = x.shape
    if (h, w) == (H, W):
        return x
    ry = _resize_matrix(H, h)
    rx = _resize_matrix(W, w)
    return jnp.einsum('Hh,nhwc,Ww->nHWc', ry, x, rx)


# --------------------------------------------------------------------------
# DAPPM forward (Pallas-backed)
# --------------------------------------------------------------------------

def dappm_forward(x_nchw, p, tile_m=512):
    x = jnp.transpose(x_nchw, (0, 2, 3, 1)).astype(jnp.float32)      # NHWC
    N, H, W, cin = x.shape
    bp = p['w0'].shape[1]
    # Inter-stage activations live in bf16 in HBM (halves kernel DMA bytes);
    # BN/ReLU math stays in f32 inside the kernels.
    x2d = x.reshape(-1, cin).astype(jnp.bfloat16)

    # x_list[0] = scale0(x): BN -> ReLU -> 1x1 conv
    x0_2d = fused_bn_relu_1x1([(x2d, p['bn0_scale'], p['bn0_shift'])],
                              p['w0'], out_dtype=jnp.bfloat16, tile_m=tile_m)
    prev = x0_2d.reshape(N, H, W, bp)
    outs_2d = [x0_2d]

    # x_list[i] = process_i(interp(scale_i(x)) + x_list[i-1]),  i = 1..3
    for k, s, pad, name in [(5, 2, 2, '1'), (9, 4, 4, '2'), (17, 8, 8, '3')]:
        pooled = avg_pool_nhwc(x, k, s, pad)
        _, ho, wo, _ = pooled.shape
        y2d = fused_bn_relu_1x1(
            [(pooled.reshape(-1, cin).astype(jnp.bfloat16),
              p[f'bn{name}_scale'], p[f'bn{name}_shift'])],
            p[f'w{name}'], out_dtype=jnp.float32, tile_m=tile_m)
        br = bilinear_resize_nhwc(y2d.reshape(N, ho, wo, bp), H, W)
        prev = process_stage(br.astype(jnp.bfloat16), prev,
                             p[f'bnp{name}_scale'], p[f'bnp{name}_shift'],
                             p[f'wp{name}_kstack'])
        outs_2d.append(prev.reshape(-1, bp))

    # x_list[4]: global average pool branch (tiny (N, cin) matmul kept in plain
    # JAX; the HxW broadcast happens inside the process kernel, not in HBM).
    gp = jnp.mean(x, axis=(1, 2))                                    # (N, cin)
    y4 = jnp.maximum(gp * p['bn4_scale'] + p['bn4_shift'], 0.0) @ p['w4']
    br4 = y4.reshape(N, 1, 1, bp).astype(jnp.bfloat16)
    prev = process_stage(br4, prev, p['bnp4_scale'], p['bnp4_shift'],
                         p['wp4_kstack'])
    outs_2d.append(prev.reshape(-1, bp))

    # compression(cat(x_list)) + shortcut(x), fused in a single M-tiled kernel.
    # The channel concat is never materialized in HBM: shortcut + compression
    # weights are pre-stacked into one (cin + 5*bp, outc) array and all six
    # activation chunks feed one long-K MXU dot per tile.
    chunks = [(x2d, p['bns_scale'], p['bns_shift'])]
    for idx, o2d in enumerate(outs_2d):
        sl = slice(idx * bp, (idx + 1) * bp)
        chunks.append((o2d, p['bnc_scale'][sl], p['bnc_shift'][sl]))
    w_stacked = jnp.concatenate([p['ws'], p['wc']], axis=0)
    out2d = fused_bn_relu_1x1(chunks, w_stacked, out_dtype=jnp.float32,
                              tile_m=tile_m)
    outc = p['wc'].shape[1]
    return out2d.reshape(N, H, W, outc).transpose(0, 3, 1, 2)        # NCHW


# --------------------------------------------------------------------------
# Pure-JAX reference (checks the Pallas kernels)
# --------------------------------------------------------------------------

def dappm_reference(x_nchw, p):
    x = jnp.transpose(x_nchw, (0, 2, 3, 1)).astype(jnp.float32)
    N, H, W, _ = x.shape
    bp = p['w0'].shape[1]

    def bnrelu(v, sc, sh):
        return jnp.maximum(v * sc + sh, 0.0)

    def conv3x3(z, w_oihw):
        w_hwio = jnp.transpose(w_oihw, (2, 3, 1, 0))
        return lax.conv_general_dilated(
            z, w_hwio, window_strides=(1, 1), padding='SAME',
            dimension_numbers=('NHWC', 'HWIO', 'NHWC'))

    x0 = bnrelu(x, p['bn0_scale'], p['bn0_shift']) @ p['w0']
    outs = [x0]
    prev = x0
    for k, s, pad, name in [(5, 2, 2, '1'), (9, 4, 4, '2'), (17, 8, 8, '3')]:
        pooled = avg_pool_nhwc(x, k, s, pad)
        y = bnrelu(pooled, p[f'bn{name}_scale'], p[f'bn{name}_shift']) @ p[f'w{name}']
        br = bilinear_resize_nhwc(y, H, W)
        z = bnrelu(br + prev, p[f'bnp{name}_scale'], p[f'bnp{name}_shift'])
        prev = conv3x3(z, p[f'wp{name}_oihw'])
        outs.append(prev)

    gp = jnp.mean(x, axis=(1, 2), keepdims=True)
    y4 = bnrelu(gp, p['bn4_scale'], p['bn4_shift']) @ p['w4']
    br4 = jnp.broadcast_to(y4, (N, H, W, bp))
    z = bnrelu(br4 + prev, p['bnp4_scale'], p['bnp4_shift'])
    prev = conv3x3(z, p['wp4_oihw'])
    outs.append(prev)

    cat = jnp.concatenate(outs, axis=-1)
    comp = bnrelu(cat, p['bnc_scale'], p['bnc_shift']) @ p['wc']
    short = bnrelu(x, p['bns_scale'], p['bns_shift']) @ p['ws']
    return jnp.transpose(comp + short, (0, 3, 1, 2))


# --------------------------------------------------------------------------
# Deterministic parameter construction
# --------------------------------------------------------------------------

def make_params(key, inplanes, bp, outplanes):
    keys = iter(jax.random.split(key, 96))

    def bn_fold(c):
        gamma = 1.0 + 0.1 * jax.random.normal(next(keys), (c,), jnp.float32)
        beta = 0.1 * jax.random.normal(next(keys), (c,), jnp.float32)
        mean = 0.1 * jax.random.normal(next(keys), (c,), jnp.float32)
        var = 1.0 + 0.1 * jax.random.uniform(next(keys), (c,), jnp.float32)
        scale = gamma / jnp.sqrt(var + BN_EPS)
        shift = beta - mean * scale
        return scale, shift

    def conv_w(cin, cout):
        return 0.1 * jax.random.normal(next(keys), (cin, cout), jnp.float32)

    p = {}
    # scale0..scale4: BN(inplanes) + 1x1 conv inplanes -> bp
    for name in ['0', '1', '2', '3', '4']:
        p[f'bn{name}_scale'], p[f'bn{name}_shift'] = bn_fold(inplanes)
        p[f'w{name}'] = conv_w(inplanes, bp)

    # process1..process4: BN(bp) + 3x3 conv bp -> bp (padding=1, no bias)
    for name in ['1', '2', '3', '4']:
        p[f'bnp{name}_scale'], p[f'bnp{name}_shift'] = bn_fold(bp)
        w_oihw = 0.1 * jax.random.normal(next(keys), (bp, bp, 3, 3), jnp.float32)
        p[f'wp{name}_oihw'] = w_oihw
        w_np = np.asarray(w_oihw)
        # Tap-major K-stacked weight: rows ordered (ky*3+kx)-major, input-ch
        # minor, matching the in-kernel im2col concat order.
        kstack = np.concatenate(
            [w_np[:, :, ky, kx].T for ky in range(3) for kx in range(3)], axis=0)
        p[f'wp{name}_kstack'] = jnp.asarray(kstack)          # (9*bp, bp)

    p['bnc_scale'], p['bnc_shift'] = bn_fold(5 * bp)
    p['wc'] = conv_w(5 * bp, outplanes)
    p['bns_scale'], p['bns_shift'] = bn_fold(inplanes)
    p['ws'] = conv_w(inplanes, outplanes)
    return p


if __name__ == "__main__":
    key = jax.random.PRNGKey(0)
    kx, kp = jax.random.split(key)

    N, inplanes, H, W = 2, 8, 16, 16
    branch_planes, outplanes = 4, 8

    x = jax.random.normal(kx, (N, inplanes, H, W), jnp.float32)
    params = make_params(kp, inplanes, branch_planes, outplanes)

    out = jax.block_until_ready(dappm_forward(x, params))
    ref = jax.block_until_ready(dappm_reference(x, params))

    assert out.shape == (N, outplanes, H, W), out.shape
    np.testing.assert_allclose(np.asarray(out), np.asarray(ref),
                               rtol=5e-2, atol=5e-2)
    print("KERNEL_OK")
</pallas_src>

<mosaic_0001>
module attributes {stable_mosaic.version = 11 : i64} {
  func.func @_fused_bnrelu_mm_kernel(%arg0: i32, %arg1: memref<512x8xbf16, #tpu.memory_space<vmem>>, %arg2: memref<1x8xf32, #tpu.memory_space<vmem>>, %arg3: memref<1x8xf32, #tpu.memory_space<vmem>>, %arg4: memref<8x4xbf16, #tpu.memory_space<vmem>>, %arg5: memref<512x4xbf16, #tpu.memory_space<vmem>>) attributes {dimension_semantics = [#tpu.dimension_semantics<parallel>], iteration_bounds = array<i64: 1>, scalar_prefetch = 0 : i64, scratch_operands = 0 : i64, tpu.core_type = #tpu.core_type<tc>, window_params = [{transform_indices = @transform_0, window_bounds = array<i64: 512, 8>}, {pipeline_mode = #tpu.pipeline_mode<synchronous>, transform_indices = @transform_1, window_bounds = array<i64: 1, 8>}, {pipeline_mode = #tpu.pipeline_mode<synchronous>, transform_indices = @transform_2, window_bounds = array<i64: 1, 8>}, {pipeline_mode = #tpu.pipeline_mode<synchronous>, transform_indices = @transform_3, window_bounds = array<i64: 8, 4>}, {transform_indices = @transform_4, window_bounds = array<i64: 512, 4>}]} {
    %c0 = arith.constant 0 : index
    %c0_0 = arith.constant 0 : index
    %0 = vector.load %arg1[%c0, %c0_0] : memref<512x8xbf16, #tpu.memory_space<vmem>>, vector<512x8xbf16>
    %1 = arith.extf %0 : vector<512x8xbf16> to vector<512x8xf32>
    %c0_1 = arith.constant 0 : index
    %c0_2 = arith.constant 0 : index
    %2 = vector.load %arg2[%c0_1, %c0_2] : memref<1x8xf32, #tpu.memory_space<vmem>>, vector<1x8xf32>
    %3 = vector.broadcast %2 : vector<1x8xf32> to vector<512x8xf32>
    %4 = arith.mulf %1, %3 : vector<512x8xf32>
    %c0_3 = arith.constant 0 : index
    %c0_4 = arith.constant 0 : index
    %5 = vector.load %arg3[%c0_3, %c0_4] : memref<1x8xf32, #tpu.memory_space<vmem>>, vector<1x8xf32>
    %6 = vector.broadcast %5 : vector<1x8xf32> to vector<512x8xf32>
    %7 = arith.addf %4, %6 : vector<512x8xf32>
    %cst = arith.constant 0.000000e+00 : f32
    %8 = vector.broadcast %cst : f32 to vector<512x8xf32>
    %9 = arith.maximumf %7, %8 : vector<512x8xf32>
    %10 = arith.truncf %9 : vector<512x8xf32> to vector<512x8xbf16>
    %c0_5 = arith.constant 0 : index
    %c0_6 = arith.constant 0 : index
    %11 = vector.load %arg4[%c0_5, %c0_6] : memref<8x4xbf16, #tpu.memory_space<vmem>>, vector<8x4xbf16>
    %cst_7 = arith.constant dense<0.000000e+00> : vector<512x4xf32>
    %12 = tpu.matmul %10, %11, %cst_7 {dimension_numbers = #tpu.dot_dimension_numbers<[1], [0], [0], [1], [0, 0, 1, 1], [], []>} : vector<512x8xbf16>, vector<8x4xbf16>, vector<512x4xf32> -> vector<512x4xf32>
    %13 = arith.truncf %12 : vector<512x4xf32> to vector<512x4xbf16>
    %c0_8 = arith.constant 0 : index
    %c0_9 = arith.constant 0 : index
    %14 = vector.load %arg5[%c0_8, %c0_9] : memref<512x4xbf16, #tpu.memory_space<vmem>>, vector<512x4xbf16>
    tpu.vector_store %arg5[%c0_8, %c0_9], %13 {strides = array<i32>} : memref<512x4xbf16, #tpu.memory_space<vmem>>, vector<512x4xbf16>,
    return
  }
  func.func @transform_0(%arg0: i32) -> (i32, i32) {
    %c0_i32 = arith.constant 0 : i32
    %c0_i32_0 = arith.constant 0 : i32
    return %arg0, %c0_i32 : i32, i32
  }
  func.func @transform_1(%arg0: i32) -> (i32, i32) {
    %c0_i32 = arith.constant 0 : i32
    %c0_i32_0 = arith.constant 0 : i32
    %c0_i32_1 = arith.constant 0 : i32
    return %c0_i32, %c0_i32_0 : i32, i32
  }
  func.func @transform_2(%arg0: i32) -> (i32, i32) {
    %c0_i32 = arith.constant 0 : i32
    %c0_i32_0 = arith.constant 0 : i32
    %c0_i32_1 = arith.constant 0 : i32
    return %c0_i32, %c0_i32_0 : i32, i32
  }
  func.func @transform_3(%arg0: i32) -> (i32, i32) {
    %c0_i32 = arith.constant 0 : i32
    %c0_i32_0 = arith.constant 0 : i32
    %c0_i32_1 = arith.constant 0 : i32
    return %c0_i32, %c0_i32_0 : i32, i32
  }
  func.func @transform_4(%arg0: i32) -> (i32, i32) {
    %c0_i32 = arith.constant 0 : i32
    %c0_i32_0 = arith.constant 0 : i32
    return %arg0, %c0_i32 : i32, i32
  }
}

module attributes {stable_mosaic.version = 11 : i64} {
  func.func @_fused_bnrelu_mm_kernel(%arg0: i32, %arg1: memref<512x8xbf16, #tpu.memory_space<vmem>>, %arg2: memref<1x8xf32, #tpu.memory_space<vmem>>, %arg3: memref<1x8xf32, #tpu.memory_space<vmem>>, %arg4: memref<8x4xbf16, #tpu.memory_space<vmem>>, %arg5: memref<512x4xbf16, #tpu.memory_space<vmem>>) attributes {dimension_semantics = [#tpu.dimension_semantics<parallel>], iteration_bounds = array<i64: 1>, scalar_prefetch = 0 : i64, scratch_operands = 0 : i64, tpu.core_type = #tpu.core_type<tc>, window_params = [{transform_indices = @transform_0, window_bounds = array<i64: 512, 8>}, {pipeline_mode = #tpu.pipeline_mode<synchronous>, transform_indices = @transform_1, window_bounds = array<i64: 1, 8>}, {pipeline_mode = #tpu.pipeline_mode<synchronous>, transform_indices = @transform_2, window_bounds = array<i64: 1, 8>}, {pipeline_mode = #tpu.pipeline_mode<synchronous>, transform_indices = @transform_3, window_bounds = array<i64: 8, 4>}, {transform_indices = @transform_4, window_bounds = array<i64: 512, 4>}]} {
    %c0 = arith.constant 0 : index
    %c0_0 = arith.constant 0 : index
    %0 = vector.load %arg1[%c0, %c0_0] : memref<512x8xbf16, #tpu.memory_space<vmem>>, vector<512x8xbf16>
    %1 = arith.extf %0 : vector<512x8xbf16> to vector<512x8xf32>
    %c0_1 = arith.constant 0 : index
    %c0_2 = arith.constant 0 : index
    %2 = vector.load %arg2[%c0_1, %c0_2] : memref<1x8xf32, #tpu.memory_space<vmem>>, vector<1x8xf32>
    %3 = vector.broadcast %2 : vector<1x8xf32> to vector<512x8xf32>
    %4 = arith.mulf %1, %3 : vector<512x8xf32>
    %c0_3 = arith.constant 0 : index
    %c0_4 = arith.constant 0 : index
    %5 = vector.load %arg3[%c0_3, %c0_4] : memref<1x8xf32, #tpu.memory_space<vmem>>, vector<1x8xf32>
    %6 = vector.broadcast %5 : vector<1x8xf32> to vector<512x8xf32>
    %7 = arith.addf %4, %6 : vector<512x8xf32>
    %cst = arith.constant 0.000000e+00 : f32
    %8 = vector.broadcast %cst : f32 to vector<512x8xf32>
    %9 = arith.maximumf %7, %8 : vector<512x8xf32>
    %10 = arith.truncf %9 : vector<512x8xf32> to vector<512x8xbf16>
    %c0_5 = arith.constant 0 : index
    %c0_6 = arith.constant 0 : index
    %11 = vector.load %arg4[%c0_5, %c0_6] : memref<8x4xbf16, #tpu.memory_space<vmem>>, vector<8x4xbf16>
    %cst_7 = arith.constant dense<0.000000e+00> : vector<512x4xf32>
    %12 = tpu.matmul %10, %11, %cst_7 {dimension_numbers = #tpu.dot_dimension_numbers<[1], [0], [0], [1], [0, 0, 1, 1], [], []>} : vector<512x8xbf16>, vector<8x4xbf16>, vector<512x4xf32> -> vector<512x4xf32>
    %13 = arith.truncf %12 : vector<512x4xf32> to vector<512x4xbf16>
    %c0_8 = arith.constant 0 : index
    %c0_9 = arith.constant 0 : index
    %14 = vector.load %arg5[%c0_8, %c0_9] : memref<512x4xbf16, #tpu.memory_space<vmem>>, vector<512x4xbf16>
    tpu.vector_store %arg5[%c0_8, %c0_9], %13 {strides = array<i32>} : memref<512x4xbf16, #tpu.memory_space<vmem>>, vector<512x4xbf16>,
    return
  }
  func.func @transform_0(%arg0: i32) -> (i32, i32) {
    %c0_i32 = arith.constant 0 : i32
    %c0_i32_0 = arith.constant 0 : i32
    return %arg0, %c0_i32 : i32, i32
  }
  func.func @transform_1(%arg0: i32) -> (i32, i32) {
    %c0_i32 = arith.constant 0 : i32
    %c0_i32_0 = arith.constant 0 : i32
    %c0_i32_1 = arith.constant 0 : i32
    return %c0_i32, %c0_i32_0 : i32, i32
  }
  func.func @transform_2(%arg0: i32) -> (i32, i32) {
    %c0_i32 = arith.constant 0 : i32
    %c0_i32_0 = arith.constant 0 : i32
    %c0_i32_1 = arith.constant 0 : i32
    return %c0_i32, %c0_i32_0 : i32, i32
  }
  func.func @transform_3(%arg0: i32) -> (i32, i32) {
    %c0_i32 = arith.constant 0 : i32
    %c0_i32_0 = arith.constant 0 : i32
    %c0_i32_1 = arith.constant 0 : i32
    return %c0_i32, %c0_i32_0 : i32, i32
  }
  func.func @transform_4(%arg0: i32) -> (i32, i32) {
    %c0_i32 = arith.constant 0 : i32
    %c0_i32_0 = arith.constant 0 : i32
    return %arg0, %c0_i32 : i32, i32
  }
}

</mosaic_0001>

<bundles_post_ra>
// kernel: tpu_custom_call.1
= control target key start
LH: loop header
LB: loop body
LE: loop exit
PB: predicated region body
PF: predicated region fallthrough
CT: control target
= control target key end

     0   :  { %vm482_vm0 = vcmask 1043456   ;;  %vm385_vm1 = vcmask 64512   ;;  %vm1031_vm2 = vcmask 27648   ;;  %s2074_s3 = inlined_call_operand.vmem [shape: bf16[8,4], index: 3, kind: input, shape index: {}]   ;;  %s2075_s0 = inlined_call_operand.vmem [shape: bf16[512,8], index: 0, kind: input, shape index: {}]   ;;  %s2076_s1 = inlined_call_operand.vmem [shape: f32[1,8], index: 1, kind: input, shape index: {}]   ;;  %s2077_s2 = inlined_call_operand.vmem [shape: f32[1,8], index: 2, kind: input, shape index: {}]   ;;  %s2078_s4 = inlined_call_operand.vmem [shape: bf16[512,4], index: 4, kind: output, shape index: {}]  }
   0x1   :  { %v384_v0 = vld [vmem:[%s2074_s3] sm:$0xf]  ;;  %v1390_v7 = vld [vmem:[%s2075_s0 + $0x8] sm:$0xff]   ;;  %v1391_v30 = vld [vmem:[%s2075_s0 + $0x10] sm:$0xff]  }
   0x2   :  { %v1263_v1 = vld [vmem:[%s2075_s0] sm:$0xff]   ;;  %1522 = vmatprep.subr.msk.bf16.mxu0 %vm482_vm0, %v384_v0  ;;  %1523 = vmatprep.subr.msk.bf16.mxu1 %vm482_vm0, %v384_v0  ;;  %v484_v3 = vsel %vm482_vm0, %v384_v0, 0  ;;  %v1268_v11 = vunpack.c.l.bf16 %v1390_v7  ;;  %v1269_v12 = vunpack.c.h.bf16 %v1390_v7  ;;  %v1406_v13 = vld [vmem:[%s2075_s0 + $0x88] sm:$0xff]   ;;  %v1407_v35 = vld [vmem:[%s2075_s0 + $0x90] sm:$0xff]   ;;  %v1272_v44 = vunpack.c.l.bf16 %v1391_v30 }
   0x3   :  { %v1558_v2 = vld [vmem:[%s2076_s1] ss:$0 sm:$0xff]  ;;  %v1264_v4 = vunpack.c.l.bf16 %v1263_v1  ;;  %v1265_v5 = vunpack.c.h.bf16 %v1263_v1  ;;  %1455 = vmatpush3.bf16.msra.mxu0 %v484_v3  ;;  %1521 = vmatpush3.bf16.msra.mxu1 %v484_v3  ;;  %v1332_v16 = vunpack.c.l.bf16 %v1406_v13  ;;  %v1333_v17 = vunpack.c.h.bf16 %v1406_v13  ;;  %v1392_v40 = vld [vmem:[%s2075_s0 + $0x18] sm:$0xff]  }
   0x4   :  { %v1405_v6 = vld [vmem:[%s2075_s0 + $0x80] sm:$0xff]   ;;  %v155_v20 = vmul.f32 %v1268_v11, %v1558_v2  ;;  %v156_v21 = vmul.f32 %v1269_v12, %v1558_v2  ;;  %v1408_v45 = vld [vmem:[%s2075_s0 + $0x98] sm:$0xff]   ;;  %v1273_v48 = vunpack.c.h.bf16 %v1391_v30  ;;  %v1336_v49 = vunpack.c.l.bf16 %v1407_v35 }
   0x5   :  { %v1569_v8 = vld [vmem:[%s2077_s2] ss:$0 sm:$0xff]  ;;  %v1328_v9 = vunpack.c.l.bf16 %v1405_v6  ;;  %v1329_v10 = vunpack.c.h.bf16 %v1405_v6  ;;  %v153_v14 = vmul.f32 %v1264_v4, %v1558_v2  ;;  %v154_v15 = vmul.f32 %v1265_v5, %v1558_v2 }
   0x6   :  { %v187_v24 = vmul.f32 %v1332_v16, %v1558_v2  ;;  %v188_v25 = vmul.f32 %v1333_v17, %v1558_v2  ;;  %v226_v28 = vadd.f32 %v1569_v8, %v155_v20  ;;  %v227_v29 = vadd.f32 %v1569_v8, %v156_v21  ;;  %v1393_v3 = vld [vmem:[%s2075_s0 + $0x20] sm:$0xff]  }
   0x7   :  { %v185_v18 = vmul.f32 %v1328_v9, %v1558_v2  ;;  %v186_v19 = vmul.f32 %v1329_v10, %v1558_v2  ;;  %v224_v22 = vadd.f32 %v1569_v8, %v153_v14  ;;  %v225_v23 = vadd.f32 %v1569_v8, %v154_v15  ;;  %v1409_v13 = vld [vmem:[%s2075_s0 + $0xa0] sm:$0xff]  }
   0x8   :  { %v258_v33 = vadd.f32 %v1569_v8, %v187_v24  ;;  %v259_v34 = vadd.f32 %v1569_v8, %v188_v25  ;;  %v290_v38 = vmax.f32 %v226_v28, 0.0  ;;  %v291_v39 = vmax.f32 %v227_v29, 0.0 }
   0x9   :  { %v256_v26 = vadd.f32 %v1569_v8, %v185_v18  ;;  %v257_v27 = vadd.f32 %v1569_v8, %v186_v19  ;;  %v288_v31 = vmax.f32 %v224_v22, 0.0  ;;  %v289_v32 = vmax.f32 %v225_v23, 0.0  ;;  %v1394_v18 = vld [vmem:[%s2075_s0 + $0x28] sm:$0xff]  }
   0xa   :  { %v322_v42 = vmax.f32 %v258_v33, 0.0  ;;  %v323_v43 = vmax.f32 %v259_v34, 0.0  ;;  %v353_v47 = vpack.c.bf16 %v291_v39, %v290_v38  ;;  %v157_v51 = vmul.f32 %v1272_v44, %v1558_v2 }
   0xb   :  { %v320_v36 = vmax.f32 %v256_v26, 0.0  ;;  %v321_v37 = vmax.f32 %v257_v27, 0.0  ;;  %v352_v41 = vpack.c.bf16 %v289_v32, %v288_v31  ;;  %v1337_v52 = vunpack.c.h.bf16 %v1407_v35  ;;  %v1410_v27 = vld [vmem:[%s2075_s0 + $0xa8] sm:$0xff]  }
   0xc   :  { %v369_v50 = vpack.c.bf16 %v323_v43, %v322_v42  ;;  %v1276_v53 = vunpack.c.l.bf16 %v1392_v40  ;;  %v158_v54 = vmul.f32 %v1273_v48, %v1558_v2  ;;  %v189_v55 = vmul.f32 %v1336_v49, %v1558_v2 }
   0xd   :  { %v368_v46 = vpack.c.bf16 %v321_v37, %v320_v36  ;;  %1456 = vmatprep.mubr.msk.bf16.mxu0 %vm385_vm1, %v352_v41  ;;  %v1277_v56 = vunpack.c.h.bf16 %v1392_v40  ;;  %v1340_v57 = vunpack.c.l.bf16 %v1408_v45  ;;  %v228_v58 = vadd.f32 %v1569_v8, %v157_v51  ;;  %v1395_v40 = vld [vmem:[%s2075_s0 + $0x30] sm:$0xff]  }
   0xe   :  { %1457 = vmatmul.mubr.msk.bf16.vlgmr.msra.gmra.mrb[0].mxu0 %vm385_vm1, %v353_v47  ;;  %v190_v59 = vmul.f32 %v1337_v52, %v1558_v2  ;;  %v159_v60 = vmul.f32 %v1276_v53, %v1558_v2  ;;  %v1341_v61 = vunpack.c.h.bf16 %v1408_v45  ;;  %v229_v62 = vadd.f32 %v1569_v8, %v158_v54  ;;  %v1411_v53 = vld [vmem:[%s2075_s0 + $0xb0] sm:$0xff]  }
   0xf   :  { %1488 = vmatprep.mubr.msk.bf16.mxu1 %vm385_vm1, %v368_v46  ;;  %v260_v63 = vadd.f32 %v1569_v8, %v189_v55  ;;  %v160_v0 = vmul.f32 %v1277_v56, %v1558_v2  ;;  %v191_v1 = vmul.f32 %v1340_v57, %v1558_v2  ;;  %v292_v4 = vmax.f32 %v228_v58, 0.0 }
  0x10   :  { %1489 = vmatmul.mubr.msk.bf16.vlgmr.msra.gmra.mrb[0].mxu1 %vm385_vm1, %v369_v50  ;;  %v261_v5 = vadd.f32 %v1569_v8, %v190_v59  ;;  %v230_v6 = vadd.f32 %v1569_v8, %v159_v60  ;;  %v192_v7 = vmul.f32 %v1341_v61, %v1558_v2  ;;  %v293_v9 = vmax.f32 %v229_v62, 0.0  ;;  %v1396_v62 = vld [vmem:[%s2075_s0 + $0x38] sm:$0xff]  }
  0x11   :  { %v324_v10 = vmax.f32 %v260_v63, 0.0  ;;  %v231_v11 = vadd.f32 %v1569_v8, %v160_v0  ;;  %v262_v12 = vadd.f32 %v1569_v8, %v191_v1  ;;  %v1280_v17 = vunpack.c.l.bf16 %v1393_v3 }
  0x12   :  { %v325_v14 = vmax.f32 %v261_v5, 0.0  ;;  %v294_v15 = vmax.f32 %v230_v6, 0.0  ;;  %v263_v16 = vadd.f32 %v1569_v8, %v192_v7  ;;  %v354_v19 = vpack.c.bf16 %v293_v9, %v292_v4  ;;  %v1412_v4 = vld [vmem:[%s2075_s0 + $0xb8] sm:$0xff]  }
  0x13   :  { %v295_v20 = vmax.f32 %v231_v11, 0.0  ;;  %v326_v21 = vmax.f32 %v262_v12, 0.0  ;;  %v1281_v22 = vunpack.c.h.bf16 %v1393_v3  ;;  %v161_v25 = vmul.f32 %v1280_v17, %v1558_v2 }
  0x14   :  { %v370_v23 = vpack.c.bf16 %v325_v14, %v324_v10  ;;  %v327_v24 = vmax.f32 %v263_v16, 0.0  ;;  %v1344_v26 = vunpack.c.l.bf16 %v1409_v13  ;;  %1460 = vmatprep.mubr.msk.bf16.mxu0 %vm385_vm1, %v354_v19  ;;  %v1345_v30 = vunpack.c.h.bf16 %v1409_v13  ;;  %v1397_v14 = vld [vmem:[%s2075_s0 + $0x40] sm:$0xff]  }
  0x15   :  { %v355_v28 = vpack.c.bf16 %v295_v20, %v294_v15  ;;  %v162_v29 = vmul.f32 %v1281_v22, %v1558_v2  ;;  %v1284_v31 = vunpack.c.l.bf16 %v1394_v18  ;;  %v232_v33 = vadd.f32 %v1569_v8, %v161_v25 }
  0x16   :  { %1492 = vmatprep.mubr.msk.bf16.mxu1 %vm385_vm1, %v370_v23  ;;  %v371_v32 = vpack.c.bf16 %v327_v24, %v326_v21  ;;  %v193_v34 = vmul.f32 %v1344_v26, %v1558_v2  ;;  %v1285_v35 = vunpack.c.h.bf16 %v1394_v18  ;;  %v194_v37 = vmul.f32 %v1345_v30, %v1558_v2 }
  0x17   :  { %1461 = vmatmul.mubr.msk.bf16.gmra.mrb[4].mxu0 %vm385_vm1, %v355_v28  ;;  %v233_v36 = vadd.f32 %v1569_v8, %v162_v29  ;;  %v163_v38 = vmul.f32 %v1284_v31, %v1558_v2  ;;  %v1348_v39 = vunpack.c.l.bf16 %v1410_v27  ;;  %v296_v41 = vmax.f32 %v232_v33, 0.0  ;;  %v1413_v31 = vld [vmem:[%s2075_s0 + $0xc0] sm:$0xff]  }
  0x18   :  { %1493 = vmatmul.mubr.msk.bf16.gmra.mrb[4].mxu1 %vm385_vm1, %v371_v32  ;;  %v264_v42 = vadd.f32 %v1569_v8, %v193_v34  ;;  %v164_v43 = vmul.f32 %v1285_v35, %v1558_v2  ;;  %v1349_v44 = vunpack.c.h.bf16 %v1410_v27  ;;  %v265_v46 = vadd.f32 %v1569_v8, %v194_v37 }
  0x19   :  { %v297_v45 = vmax.f32 %v233_v36, 0.0  ;;  %v234_v47 = vadd.f32 %v1569_v8, %v163_v38  ;;  %v195_v48 = vmul.f32 %v1348_v39, %v1558_v2  ;;  %v1288_v52 = vunpack.c.l.bf16 %v1395_v40  ;;  %v1398_v36 = vld [vmem:[%s2075_s0 + $0x48] sm:$0xff]  }
  0x1a   :  { %v328_v49 = vmax.f32 %v264_v42, 0.0  ;;  %v235_v50 = vadd.f32 %v1569_v8, %v164_v43  ;;  %v196_v51 = vmul.f32 %v1349_v44, %v1558_v2  ;;  %v329_v55 = vmax.f32 %v265_v46, 0.0 }
  0x1b   :  { %v356_v54 = vpack.c.bf16 %v297_v45, %v296_v41  ;;  %v298_v56 = vmax.f32 %v234_v47, 0.0  ;;  %v266_v57 = vadd.f32 %v1569_v8, %v195_v48  ;;  %v1289_v60 = vunpack.c.h.bf16 %v1395_v40  ;;  %v1414_v45 = vld [vmem:[%s2075_s0 + $0xc8] sm:$0xff]  }
  0x1c   :  { %v299_v58 = vmax.f32 %v235_v50, 0.0  ;;  %v267_v59 = vadd.f32 %v1569_v8, %v196_v51  ;;  %v165_v61 = vmul.f32 %v1288_v52, %v1558_v2  ;;  %v372_v63 = vpack.c.bf16 %v329_v55, %v328_v49 }
  0x1d   :  { %1464 = vmatprep.mubr.msk.bf16.mxu0 %vm385_vm1, %v356_v54  ;;  %v330_v0 = vmax.f32 %v266_v57, 0.0  ;;  %v1352_v1 = vunpack.c.l.bf16 %v1411_v53  ;;  %v1353_v3 = vunpack.c.h.bf16 %v1411_v53  ;;  %v166_v7 = vmul.f32 %v1289_v60, %v1558_v2 }
  0x1e   :  { %v357_v5 = vpack.c.bf16 %v299_v58, %v298_v56  ;;  %v331_v6 = vmax.f32 %v267_v59, 0.0  ;;  %v236_v9 = vadd.f32 %v1569_v8, %v165_v61  ;;  %1496 = vmatprep.mubr.msk.bf16.mxu1 %vm385_vm1, %v372_v63  ;;  %v1292_v12 = vunpack.c.l.bf16 %v1396_v62  ;;  %v1399_v58 = vld [vmem:[%s2075_s0 + $0x50] sm:$0xff]  }
  0x1f   :  { %v197_v10 = vmul.f32 %v1352_v1, %v1558_v2  ;;  %v198_v11 = vmul.f32 %v1353_v3, %v1558_v2  ;;  %v1293_v13 = vunpack.c.h.bf16 %v1396_v62  ;;  %v237_v16 = vadd.f32 %v1569_v8, %v166_v7 }
  0x20   :  { %1465 = vmatmul.mubr.msk.bf16.gmra.mrb[8].mxu0 %vm385_vm1, %v357_v5  ;;  %v373_v15 = vpack.c.bf16 %v331_v6, %v330_v0  ;;  %v300_v17 = vmax.f32 %v236_v9, 0.0  ;;  %v1356_v18 = vunpack.c.l.bf16 %v1412_v4  ;;  %v167_v21 = vmul.f32 %v1292_v12, %v1558_v2 }
  0x21   :  { %v268_v19 = vadd.f32 %v1569_v8, %v197_v10  ;;  %v269_v20 = vadd.f32 %v1569_v8, %v198_v11  ;;  %v168_v22 = vmul.f32 %v1293_v13, %v1558_v2  ;;  %v301_v23 = vmax.f32 %v237_v16, 0.0 }
  0x22   :  { %1497 = vmatmul.mubr.msk.bf16.gmra.mrb[8].mxu1 %vm385_vm1, %v373_v15  ;;  %v1357_v24 = vunpack.c.h.bf16 %v1412_v4  ;;  %v199_v25 = vmul.f32 %v1356_v18, %v1558_v2  ;;  %v1296_v26 = vunpack.c.l.bf16 %v1397_v14  ;;  %v238_v29 = vadd.f32 %v1569_v8, %v167_v21  ;;  %v1415_v4 = vld [vmem:[%s2075_s0 + $0xd0] sm:$0xff]   ;;  %v1400_v18 = vld [vmem:[%s2075_s0 + $0x58] sm:$0xff]  }
  0x23   :  { %v332_v27 = vmax.f32 %v268_v19, 0.0  ;;  %v333_v28 = vmax.f32 %v269_v20, 0.0  ;;  %v239_v30 = vadd.f32 %v1569_v8, %v168_v22  ;;  %v358_v32 = vpack.c.bf16 %v301_v23, %v300_v17  ;;  %v1416_v23 = vld [vmem:[%s2075_s0 + $0xd8] sm:$0xff]  }
  0x24   :  { %v200_v33 = vmul.f32 %v1357_v24, %v1558_v2  ;;  %v270_v34 = vadd.f32 %v1569_v8, %v199_v25  ;;  %v1297_v35 = vunpack.c.h.bf16 %v1397_v14  ;;  %v302_v38 = vmax.f32 %v238_v29, 0.0 }
  0x25   :  { %v374_v37 = vpack.c.bf16 %v333_v28, %v332_v27  ;;  %v303_v39 = vmax.f32 %v239_v30, 0.0  ;;  %v169_v40 = vmul.f32 %v1296_v26, %v1558_v2  ;;  %1468 = vmatprep.mubr.msk.bf16.mxu0 %vm385_vm1, %v358_v32  ;;  %v1360_v44 = vunpack.c.l.bf16 %v1413_v31 }
  0x26   :  { %v271_v41 = vadd.f32 %v1569_v8, %v200_v33  ;;  %v334_v42 = vmax.f32 %v270_v34, 0.0  ;;  %v170_v43 = vmul.f32 %v1297_v35, %v1558_v2  ;;  %v1361_v48 = vunpack.c.h.bf16 %v1413_v31 }
  0x27   :  { %1500 = vmatprep.mubr.msk.bf16.mxu1 %vm385_vm1, %v374_v37  ;;  %v359_v46 = vpack.c.bf16 %v303_v39, %v302_v38  ;;  %v240_v47 = vadd.f32 %v1569_v8, %v169_v40  ;;  %v1300_v49 = vunpack.c.l.bf16 %v1398_v36  ;;  %v201_v52 = vmul.f32 %v1360_v44, %v1558_v2 }
  0x28   :  { %v335_v50 = vmax.f32 %v271_v41, 0.0  ;;  %v241_v51 = vadd.f32 %v1569_v8, %v170_v43  ;;  %v1301_v53 = vunpack.c.h.bf16 %v1398_v36  ;;  %v202_v55 = vmul.f32 %v1361_v48, %v1558_v2  ;;  %v1401_v36 = vld [vmem:[%s2075_s0 + $0x60] sm:$0xff]  }
  0x29   :  { %1469 = vmatmul.mubr.msk.bf16.gmra.mrb[12].mxu0 %vm385_vm1, %v359_v46  ;;  %v304_v54 = vmax.f32 %v240_v47, 0.0  ;;  %v171_v56 = vmul.f32 %v1300_v49, %v1558_v2  ;;  %v1364_v57 = vunpack.c.l.bf16 %v1414_v45  ;;  %v272_v61 = vadd.f32 %v1569_v8, %v201_v52  ;;  %v1417_v49 = vld [vmem:[%s2075_s0 + $0xe0] sm:$0xff]  }
  0x2a   :  { %v375_v59 = vpack.c.bf16 %v335_v50, %v334_v42  ;;  %v305_v60 = vmax.f32 %v241_v51, 0.0  ;;  %v172_v62 = vmul.f32 %v1301_v53, %v1558_v2  ;;  %v273_v63 = vadd.f32 %v1569_v8, %v202_v55 }
  0x2b   :  { %v242_v0 = vadd.f32 %v1569_v8, %v171_v56  ;;  %v1365_v1 = vunpack.c.h.bf16 %v1414_v45  ;;  %v203_v3 = vmul.f32 %v1364_v57, %v1558_v2  ;;  %v336_v6 = vmax.f32 %v272_v61, 0.0 }
  0x2c   :  { %1501 = vmatmul.mubr.msk.bf16.gmra.mrb[12].mxu1 %vm385_vm1, %v375_v59  ;;  %v360_v5 = vpack.c.bf16 %v305_v60, %v304_v54  ;;  %v243_v7 = vadd.f32 %v1569_v8, %v172_v62  ;;  %v1304_v9 = vunpack.c.l.bf16 %v1399_v58  ;;  %v337_v10 = vmax.f32 %v273_v63, 0.0  ;;  %v1402_v54 = vld [vmem:[%s2075_s0 + $0x68] sm:$0xff]  }
  0x2d   :  { %v306_v11 = vmax.f32 %v242_v0, 0.0  ;;  %v204_v12 = vmul.f32 %v1365_v1, %v1558_v2  ;;  %v274_v13 = vadd.f32 %v1569_v8, %v203_v3  ;;  %v1305_v15 = vunpack.c.h.bf16 %v1399_v58  ;;  %v1418_v63 = vld [vmem:[%s2075_s0 + $0xe8] sm:$0xff]  }
  0x2e   :  { %1472 = vmatprep.mubr.msk.bf16.mxu0 %vm385_vm1, %v360_v5  ;;  %v307_v14 = vmax.f32 %v243_v7, 0.0  ;;  %v173_v16 = vmul.f32 %v1304_v9, %v1558_v2  ;;  %v1368_v17 = vunpack.c.l.bf16 %v1415_v4  ;;  %v376_v19 = vpack.c.bf16 %v337_v10, %v336_v6 }
  0x2f   :  { %v275_v20 = vadd.f32 %v1569_v8, %v204_v12  ;;  %v338_v21 = vmax.f32 %v274_v13, 0.0  ;;  %v1369_v22 = vunpack.c.h.bf16 %v1415_v4  ;;  %v174_v25 = vmul.f32 %v1305_v15, %v1558_v2 }
  0x30   :  { %v361_v24 = vpack.c.bf16 %v307_v14, %v306_v11  ;;  %v244_v26 = vadd.f32 %v1569_v8, %v173_v16  ;;  %v205_v27 = vmul.f32 %v1368_v17, %v1558_v2  ;;  %1504 = vmatprep.mubr.msk.bf16.mxu1 %vm385_vm1, %v376_v19  ;;  %v1308_v30 = vunpack.c.l.bf16 %v1400_v18  ;;  %v1403_v14 = vld [vmem:[%s2075_s0 + $0x70] sm:$0xff]  }
  0x31   :  { %v339_v28 = vmax.f32 %v275_v20, 0.0  ;;  %v206_v29 = vmul.f32 %v1369_v22, %v1558_v2  ;;  %v1309_v31 = vunpack.c.h.bf16 %v1400_v18  ;;  %v245_v32 = vadd.f32 %v1569_v8, %v174_v25 }
  0x32   :  { %1473 = vmatmul.mubr.msk.bf16.gmra.mrb[16].mxu0 %vm385_vm1, %v361_v24  ;;  %v308_v33 = vmax.f32 %v244_v26, 0.0  ;;  %v276_v34 = vadd.f32 %v1569_v8, %v205_v27  ;;  %v1372_v35 = vunpack.c.l.bf16 %v1416_v23  ;;  %v175_v39 = vmul.f32 %v1308_v30, %v1558_v2 }
  0x33   :  { %v377_v37 = vpack.c.bf16 %v339_v28, %v338_v21  ;;  %v277_v38 = vadd.f32 %v1569_v8, %v206_v29  ;;  %v176_v40 = vmul.f32 %v1309_v31, %v1558_v2  ;;  %v309_v41 = vmax.f32 %v245_v32, 0.0 }
  0x34   :  { %v340_v42 = vmax.f32 %v276_v34, 0.0  ;;  %v1373_v43 = vunpack.c.h.bf16 %v1416_v23  ;;  %v207_v44 = vmul.f32 %v1372_v35, %v1558_v2  ;;  %v246_v46 = vadd.f32 %v1569_v8, %v175_v39  ;;  %v1419_v23 = vld [vmem:[%s2075_s0 + $0xf0] sm:$0xff]  }
  0x35   :  { %1505 = vmatmul.mubr.msk.bf16.gmra.mrb[16].mxu1 %vm385_vm1, %v377_v37  ;;  %v341_v45 = vmax.f32 %v277_v38, 0.0  ;;  %v247_v47 = vadd.f32 %v1569_v8, %v176_v40  ;;  %v1312_v48 = vunpack.c.l.bf16 %v1401_v36  ;;  %v362_v50 = vpack.c.bf16 %v309_v41, %v308_v33  ;;  %v1420_v41 = vld [vmem:[%s2075_s0 + $0xf8] sm:$0xff]  }
  0x36   :  { %v208_v51 = vmul.f32 %v1373_v43, %v1558_v2  ;;  %v278_v52 = vadd.f32 %v1569_v8, %v207_v44  ;;  %v1313_v53 = vunpack.c.h.bf16 %v1401_v36  ;;  %v310_v56 = vmax.f32 %v246_v46, 0.0  ;;  %v1404_v36 = vld [vmem:[%s2075_s0 + $0x78] sm:$0xff]  }
  0x37   :  { %v378_v55 = vpack.c.bf16 %v341_v45, %v340_v42  ;;  %v311_v57 = vmax.f32 %v247_v47, 0.0  ;;  %v177_v58 = vmul.f32 %v1312_v48, %v1558_v2  ;;  %1476 = vmatprep.mubr.msk.bf16.mxu0 %vm385_vm1, %v362_v50  ;;  %v1376_v62 = vunpack.c.l.bf16 %v1417_v49 }
  0x38   :  { %v279_v59 = vadd.f32 %v1569_v8, %v208_v51  ;;  %v342_v60 = vmax.f32 %v278_v52, 0.0  ;;  %v178_v61 = vmul.f32 %v1313_v53, %v1558_v2  ;;  %v1377_v3 = vunpack.c.h.bf16 %v1417_v49 }
  0x39   :  { %1508 = vmatprep.mubr.msk.bf16.mxu1 %vm385_vm1, %v378_v55  ;;  %v363_v0 = vpack.c.bf16 %v311_v57, %v310_v56  ;;  %v248_v1 = vadd.f32 %v1569_v8, %v177_v58  ;;  %v1316_v4 = vunpack.c.l.bf16 %v1402_v54  ;;  %v209_v7 = vmul.f32 %v1376_v62, %v1558_v2 }
  0x3a   :  { %v343_v5 = vmax.f32 %v279_v59, 0.0  ;;  %v249_v6 = vadd.f32 %v1569_v8, %v178_v61  ;;  %v1317_v9 = vunpack.c.h.bf16 %v1402_v54  ;;  %v210_v11 = vmul.f32 %v1377_v3, %v1558_v2 }
  0x3b   :  { %1477 = vmatmul.mubr.msk.bf16.gmra.mrb[20].mxu0 %vm385_vm1, %v363_v0  ;;  %v312_v10 = vmax.f32 %v248_v1, 0.0  ;;  %v179_v12 = vmul.f32 %v1316_v4, %v1558_v2  ;;  %v1380_v13 = vunpack.c.l.bf16 %v1418_v63  ;;  %v280_v17 = vadd.f32 %v1569_v8, %v209_v7 }
  0x3c   :  { %v379_v15 = vpack.c.bf16 %v343_v5, %v342_v60  ;;  %v313_v16 = vmax.f32 %v249_v6, 0.0  ;;  %v180_v18 = vmul.f32 %v1317_v9, %v1558_v2  ;;  %v281_v19 = vadd.f32 %v1569_v8, %v210_v11 }
  0x3d   :  { %v250_v20 = vadd.f32 %v1569_v8, %v179_v12  ;;  %v1381_v21 = vunpack.c.h.bf16 %v1418_v63  ;;  %v211_v22 = vmul.f32 %v1380_v13, %v1558_v2  ;;  %v344_v25 = vmax.f32 %v280_v17, 0.0 }
  0x3e   :  { %1509 = vmatmul.mubr.msk.bf16.gmra.mrb[20].mxu1 %vm385_vm1, %v379_v15  ;;  %v364_v24 = vpack.c.bf16 %v313_v16, %v312_v10  ;;  %v251_v26 = vadd.f32 %v1569_v8, %v180_v18  ;;  %v1320_v27 = vunpack.c.l.bf16 %v1403_v14  ;;  %v345_v28 = vmax.f32 %v281_v19, 0.0 }
  0x3f   :  { %v314_v29 = vmax.f32 %v250_v20, 0.0  ;;  %v212_v30 = vmul.f32 %v1381_v21, %v1558_v2  ;;  %v282_v31 = vadd.f32 %v1569_v8, %v211_v22  ;;  %v1321_v33 = vunpack.c.h.bf16 %v1403_v14 }
  0x40   :  { %1480 = vmatprep.mubr.msk.bf16.mxu0 %vm385_vm1, %v364_v24  ;;  %v315_v32 = vmax.f32 %v251_v26, 0.0  ;;  %v181_v34 = vmul.f32 %v1320_v27, %v1558_v2  ;;  %v1384_v35 = vunpack.c.l.bf16 %v1419_v23  ;;  %v380_v37 = vpack.c.bf16 %v345_v28, %v344_v25 }
  0x41   :  { %v283_v38 = vadd.f32 %v1569_v8, %v212_v30  ;;  %v346_v39 = vmax.f32 %v282_v31, 0.0  ;;  %v1385_v40 = vunpack.c.h.bf16 %v1419_v23  ;;  %v182_v43 = vmul.f32 %v1321_v33, %v1558_v2 }
  0x42   :  { %v365_v42 = vpack.c.bf16 %v315_v32, %v314_v29  ;;  %v252_v44 = vadd.f32 %v1569_v8, %v181_v34  ;;  %v213_v45 = vmul.f32 %v1384_v35, %v1558_v2  ;;  %1512 = vmatprep.mubr.msk.bf16.mxu1 %vm385_vm1, %v380_v37  ;;  %v1324_v48 = vunpack.c.l.bf16 %v1404_v36 }
  0x43   :  { %v347_v46 = vmax.f32 %v283_v38, 0.0  ;;  %v214_v47 = vmul.f32 %v1385_v40, %v1558_v2  ;;  %v1325_v49 = vunpack.c.h.bf16 %v1404_v36  ;;  %v253_v50 = vadd.f32 %v1569_v8, %v182_v43 }
  0x44   :  { %1481 = vmatmul.mubr.msk.bf16.gmra.mrb[24].mxu0 %vm385_vm1, %v365_v42  ;;  %v316_v51 = vmax.f32 %v252_v44, 0.0  ;;  %v284_v52 = vadd.f32 %v1569_v8, %v213_v45  ;;  %v1388_v53 = vunpack.c.l.bf16 %v1420_v41  ;;  %v183_v56 = vmul.f32 %v1324_v48, %v1558_v2 }
  0x45   :  { %v381_v54 = vpack.c.bf16 %v347_v46, %v346_v39  ;;  %v285_v55 = vadd.f32 %v1569_v8, %v214_v47  ;;  %v184_v57 = vmul.f32 %v1325_v49, %v1558_v2  ;;  %v317_v58 = vmax.f32 %v253_v50, 0.0 }
  0x46   :  { %v348_v59 = vmax.f32 %v284_v52, 0.0  ;;  %v1389_v60 = vunpack.c.h.bf16 %v1420_v41  ;;  %v215_v61 = vmul.f32 %v1388_v53, %v1558_v2  ;;  %v254_v63 = vadd.f32 %v1569_v8, %v183_v56 }
  0x47   :  { %1513 = vmatmul.mubr.msk.bf16.gmra.mrb[24].mxu1 %vm385_vm1, %v381_v54  ;;  %v349_v62 = vmax.f32 %v285_v55, 0.0  ;;  %v255_v0 = vadd.f32 %v1569_v8, %v184_v57  ;;  %v366_v1 = vpack.c.bf16 %v317_v58, %v316_v51 }
  0x48   :  { %v216_v3 = vmul.f32 %v1389_v60, %v1558_v2  ;;  %v286_v4 = vadd.f32 %v1569_v8, %v215_v61  ;;  %v318_v6 = vmax.f32 %v254_v63, 0.0 }
  0x49   :  { %v382_v5 = vpack.c.bf16 %v349_v62, %v348_v59  ;;  %v319_v7 = vmax.f32 %v255_v0, 0.0  ;;  %1484 = vmatprep.mubr.msk.bf16.mxu0 %vm385_vm1, %v366_v1 }
  0x4a   :  { %v287_v9 = vadd.f32 %v1569_v8, %v216_v3  ;;  %v350_v10 = vmax.f32 %v286_v4, 0.0 }
  0x4b   :  { %1516 = vmatprep.mubr.msk.bf16.mxu1 %vm385_vm1, %v382_v5  ;;  %v367_v11 = vpack.c.bf16 %v319_v7, %v318_v6 }
  0x4c   :  { %v351_v12 = vmax.f32 %v287_v9, 0.0 }
  0x4d   :  { %1485 = vmatmul.mubr.msk.bf16.gmra.mrb[28].mxu0 %vm385_vm1, %v367_v11 }
  0x4e   :  { %v383_v13 = vpack.c.bf16 %v351_v12, %v350_v10 }
  0x50   :  { %1517 = vmatmul.mubr.msk.bf16.gmra.mrb[28].mxu1 %vm385_vm1, %v383_v13 }
  0xe1   :  { %v1458_v2 = vpop.f32.mrb[0].mxu0 }
  0xe2   :  { %v1200_v14 = vpack.c.bf16 %v1458_v2, %v1458_v2  ;;  %v520_v16 = vpop.f32.mrb[1].mxu0 }
  0xe3   :  { %v1490_v15 = vpop.f32.mrb[0].mxu1  ;;  %v1198_v18 = vpack.c.bf16 %v520_v16, %v520_v16  ;;  %v1459_v20 = vpop.f32.mrb[2].mxu0 }
  0xe4   :  { %v1232_v17 = vpack.c.bf16 %v1490_v15, %v1490_v15  ;;  %v648_v19 = vpop.f32.mrb[1].mxu1  ;;  %1034 = vst.msk [vmem:[%s2078_s4 + $0x8] sm:$0xf] %vm1031_vm2, %v1200_v14  ;;  %v1201_v21 = vpack.c.bf16 %v1459_v20, %v1459_v20  ;;  %v523_v23 = vpop.f32.mrb[3].mxu0 }
  0xe5   :  { %v1230_v8 = vpack.c.bf16 %v648_v19, %v648_v19  ;;  %v1491_v22 = vpop.f32.mrb[2].mxu1  ;;  %1032 = vst.msk [vmem:[%s2078_s4] sm:$0xf] %vm1031_vm2, %v1198_v18  ;;  %v1199_v25 = vpack.c.bf16 %v523_v23, %v523_v23 }
  0xe6   :  { %1066 = vst.msk [vmem:[%s2078_s4 + $0x88] sm:$0xf] %vm1031_vm2, %v1232_v17  ;;  %v1233_v24 = vpack.c.bf16 %v1491_v22, %v1491_v22  ;;  %v651_v26 = vpop.f32.mrb[3].mxu1  ;;  %1035 = vst.msk [vmem:[%s2078_s4 + $0xc] sm:$0xf] %vm1031_vm2, %v1201_v21 }
  0xe7   :  { %1064 = vst.msk [vmem:[%s2078_s4 + $0x80] sm:$0xf] %vm1031_vm2, %v1230_v8  ;;  %v1231_v27 = vpack.c.bf16 %v651_v26, %v651_v26  ;;  %1033 = vst.msk [vmem:[%s2078_s4 + $0x4] sm:$0xf] %vm1031_vm2, %v1199_v25 }
  0xe8   :  { %1067 = vst.msk [vmem:[%s2078_s4 + $0x8c] sm:$0xf] %vm1031_vm2, %v1233_v24 }
  0xe9   :  { %1065 = vst.msk [vmem:[%s2078_s4 + $0x84] sm:$0xf] %vm1031_vm2, %v1231_v27 }
  0xea   :  { %v1462_v28 = vpop.f32.mrb[4].mxu0 }
  0xeb   :  { %v1204_v29 = vpack.c.bf16 %v1462_v28, %v1462_v28  ;;  %v1494_v30 = vpop.f32.mrb[4].mxu1  ;;  %v536_v31 = vpop.f32.mrb[5].mxu0 }
  0xec   :  { %v1236_v32 = vpack.c.bf16 %v1494_v30, %v1494_v30  ;;  %v1202_v33 = vpack.c.bf16 %v536_v31, %v536_v31  ;;  %v664_v34 = vpop.f32.mrb[5].mxu1  ;;  %v1463_v35 = vpop.f32.mrb[6].mxu0 }
  0xed   :  { %1038 = vst.msk [vmem:[%s2078_s4 + $0x18] sm:$0xf] %vm1031_vm2, %v1204_v29  ;;  %v1234_v36 = vpack.c.bf16 %v664_v34, %v664_v34  ;;  %v1205_v37 = vpack.c.bf16 %v1463_v35, %v1463_v35  ;;  %v1495_v38 = vpop.f32.mrb[6].mxu1  ;;  %v539_v39 = vpop.f32.mrb[7].mxu0 }
  0xee   :  { %1070 = vst.msk [vmem:[%s2078_s4 + $0x98] sm:$0xf] %vm1031_vm2, %v1236_v32  ;;  %1036 = vst.msk [vmem:[%s2078_s4 + $0x10] sm:$0xf] %vm1031_vm2, %v1202_v33  ;;  %v1237_v40 = vpack.c.bf16 %v1495_v38, %v1495_v38  ;;  %v1203_v41 = vpack.c.bf16 %v539_v39, %v539_v39  ;;  %v667_v42 = vpop.f32.mrb[7].mxu1 }
  0xef   :  { %1068 = vst.msk [vmem:[%s2078_s4 + $0x90] sm:$0xf] %vm1031_vm2, %v1234_v36  ;;  %1039 = vst.msk [vmem:[%s2078_s4 + $0x1c] sm:$0xf] %vm1031_vm2, %v1205_v37  ;;  %v1235_v43 = vpack.c.bf16 %v667_v42, %v667_v42 }
  0xf0   :  { %1071 = vst.msk [vmem:[%s2078_s4 + $0x9c] sm:$0xf] %vm1031_vm2, %v1237_v40  ;;  %1037 = vst.msk [vmem:[%s2078_s4 + $0x14] sm:$0xf] %vm1031_vm2, %v1203_v41 }
  0xf1   :  { %1069 = vst.msk [vmem:[%s2078_s4 + $0x94] sm:$0xf] %vm1031_vm2, %v1235_v43 }
  0xf3   :  { %v1466_v44 = vpop.f32.mrb[8].mxu0 }
  0xf4   :  { %v1208_v45 = vpack.c.bf16 %v1466_v44, %v1466_v44  ;;  %v552_v46 = vpop.f32.mrb[9].mxu0 }
  0xf5   :  { %v1498_v47 = vpop.f32.mrb[8].mxu1  ;;  %v1206_v48 = vpack.c.bf16 %v552_v46, %v552_v46  ;;  %v1467_v49 = vpop.f32.mrb[10].mxu0 }
  0xf6   :  { %1042 = vst.msk [vmem:[%s2078_s4 + $0x28] sm:$0xf] %vm1031_vm2, %v1208_v45  ;;  %v1240_v50 = vpack.c.bf16 %v1498_v47, %v1498_v47  ;;  %v680_v51 = vpop.f32.mrb[9].mxu1  ;;  %v1209_v52 = vpack.c.bf16 %v1467_v49, %v1467_v49  ;;  %v555_v53 = vpop.f32.mrb[11].mxu0 }
  0xf7   :  { %1040 = vst.msk [vmem:[%s2078_s4 + $0x20] sm:$0xf] %vm1031_vm2, %v1206_v48  ;;  %v1238_v54 = vpack.c.bf16 %v680_v51, %v680_v51  ;;  %v1499_v55 = vpop.f32.mrb[10].mxu1  ;;  %v1207_v56 = vpack.c.bf16 %v555_v53, %v555_v53 }
  0xf8   :  { %1074 = vst.msk [vmem:[%s2078_s4 + $0xa8] sm:$0xf] %vm1031_vm2, %v1240_v50  ;;  %1043 = vst.msk [vmem:[%s2078_s4 + $0x2c] sm:$0xf] %vm1031_vm2, %v1209_v52  ;;  %v1241_v57 = vpack.c.bf16 %v1499_v55, %v1499_v55  ;;  %v683_v58 = vpop.f32.mrb[11].mxu1 }
  0xf9   :  { %1072 = vst.msk [vmem:[%s2078_s4 + $0xa0] sm:$0xf] %vm1031_vm2, %v1238_v54  ;;  %1041 = vst.msk [vmem:[%s2078_s4 + $0x24] sm:$0xf] %vm1031_vm2, %v1207_v56  ;;  %v1239_v59 = vpack.c.bf16 %v683_v58, %v683_v58 }
  0xfa   :  { %1075 = vst.msk [vmem:[%s2078_s4 + $0xac] sm:$0xf] %vm1031_vm2, %v1241_v57 }
  0xfb   :  { %1073 = vst.msk [vmem:[%s2078_s4 + $0xa4] sm:$0xf] %vm1031_vm2, %v1239_v59 }
  0xfc   :  { %v1470_v60 = vpop.f32.mrb[12].mxu0 }
  0xfd   :  { %v1212_v61 = vpack.c.bf16 %v1470_v60, %v1470_v60  ;;  %v568_v62 = vpop.f32.mrb[13].mxu0 }
  0xfe   :  { %v1210_v63 = vpack.c.bf16 %v568_v62, %v568_v62  ;;  %v1471_v0 = vpop.f32.mrb[14].mxu0 }
  0xff   :  { %1046 = vst.msk [vmem:[%s2078_s4 + $0x38] sm:$0xf] %vm1031_vm2, %v1212_v61  ;;  %v1502_v1 = vpop.f32.mrb[12].mxu1  ;;  %v1213_v3 = vpack.c.bf16 %v1471_v0, %v1471_v0  ;;  %v571_v4 = vpop.f32.mrb[15].mxu0 }
 0x100   :  { %v1244_v5 = vpack.c.bf16 %v1502_v1, %v1502_v1  ;;  %1044 = vst.msk [vmem:[%s2078_s4 + $0x30] sm:$0xf] %vm1031_vm2, %v1210_v63  ;;  %v696_v6 = vpop.f32.mrb[13].mxu1  ;;  %v1211_v7 = vpack.c.bf16 %v571_v4, %v571_v4 }
 0x101   :  { %v1242_v9 = vpack.c.bf16 %v696_v6, %v696_v6  ;;  %1047 = vst.msk [vmem:[%s2078_s4 + $0x3c] sm:$0xf] %vm1031_vm2, %v1213_v3  ;;  %v1503_v10 = vpop.f32.mrb[14].mxu1 }
 0x102   :  { %1078 = vst.msk [vmem:[%s2078_s4 + $0xb8] sm:$0xf] %vm1031_vm2, %v1244_v5  ;;  %v1245_v11 = vpack.c.bf16 %v1503_v10, %v1503_v10  ;;  %1045 = vst.msk [vmem:[%s2078_s4 + $0x34] sm:$0xf] %vm1031_vm2, %v1211_v7  ;;  %v699_v12 = vpop.f32.mrb[15].mxu1 }
 0x103   :  { %1076 = vst.msk [vmem:[%s2078_s4 + $0xb0] sm:$0xf] %vm1031_vm2, %v1242_v9  ;;  %v1243_v13 = vpack.c.bf16 %v699_v12, %v699_v12 }
 0x104   :  { %1079 = vst.msk [vmem:[%s2078_s4 + $0xbc] sm:$0xf] %vm1031_vm2, %v1245_v11 }
 0x105   :  { %1077 = vst.msk [vmem:[%s2078_s4 + $0xb4] sm:$0xf] %vm1031_vm2, %v1243_v13  ;;  %v1474_v2 = vpop.f32.mrb[16].mxu0 }
 0x106   :  { %v1216_v14 = vpack.c.bf16 %v1474_v2, %v1474_v2  ;;  %v584_v15 = vpop.f32.mrb[17].mxu0 }
 0x107   :  { %v1214_v16 = vpack.c.bf16 %v584_v15, %v584_v15  ;;  %v1475_v17 = vpop.f32.mrb[18].mxu0 }
 0x108   :  { %1050 = vst.msk [vmem:[%s2078_s4 + $0x48] sm:$0xf] %vm1031_vm2, %v1216_v14  ;;  %v1506_v18 = vpop.f32.mrb[16].mxu1  ;;  %v1217_v19 = vpack.c.bf16 %v1475_v17, %v1475_v17  ;;  %v587_v20 = vpop.f32.mrb[19].mxu0 }
 0x109   :  { %v1248_v8 = vpack.c.bf16 %v1506_v18, %v1506_v18  ;;  %1048 = vst.msk [vmem:[%s2078_s4 + $0x40] sm:$0xf] %vm1031_vm2, %v1214_v16  ;;  %v712_v21 = vpop.f32.mrb[17].mxu1  ;;  %v1215_v22 = vpack.c.bf16 %v587_v20, %v587_v20 }
 0x10a   :  { %v1246_v23 = vpack.c.bf16 %v712_v21, %v712_v21  ;;  %1051 = vst.msk [vmem:[%s2078_s4 + $0x4c] sm:$0xf] %vm1031_vm2, %v1217_v19  ;;  %v1507_v24 = vpop.f32.mrb[18].mxu1 }
 0x10b   :  { %1082 = vst.msk [vmem:[%s2078_s4 + $0xc8] sm:$0xf] %vm1031_vm2, %v1248_v8  ;;  %v1249_v25 = vpack.c.bf16 %v1507_v24, %v1507_v24  ;;  %1049 = vst.msk [vmem:[%s2078_s4 + $0x44] sm:$0xf] %vm1031_vm2, %v1215_v22  ;;  %v715_v26 = vpop.f32.mrb[19].mxu1 }
 0x10c   :  { %1080 = vst.msk [vmem:[%s2078_s4 + $0xc0] sm:$0xf] %vm1031_vm2, %v1246_v23  ;;  %v1247_v27 = vpack.c.bf16 %v715_v26, %v715_v26 }
 0x10d   :  { %1083 = vst.msk [vmem:[%s2078_s4 + $0xcc] sm:$0xf] %vm1031_vm2, %v1249_v25 }
 0x10e   :  { %1081 = vst.msk [vmem:[%s2078_s4 + $0xc4] sm:$0xf] %vm1031_vm2, %v1247_v27  ;;  %v1478_v28 = vpop.f32.mrb[20].mxu0 }
 0x10f   :  { %v1220_v29 = vpack.c.bf16 %v1478_v28, %v1478_v28  ;;  %v600_v30 = vpop.f32.mrb[21].mxu0 }
 0x110   :  { %v1218_v31 = vpack.c.bf16 %v600_v30, %v600_v30  ;;  %v1479_v32 = vpop.f32.mrb[22].mxu0 }
 0x111   :  { %1054 = vst.msk [vmem:[%s2078_s4 + $0x58] sm:$0xf] %vm1031_vm2, %v1220_v29  ;;  %v1510_v33 = vpop.f32.mrb[20].mxu1  ;;  %v1221_v34 = vpack.c.bf16 %v1479_v32, %v1479_v32  ;;  %v603_v35 = vpop.f32.mrb[23].mxu0 }
 0x112   :  { %v1252_v36 = vpack.c.bf16 %v1510_v33, %v1510_v33  ;;  %1052 = vst.msk [vmem:[%s2078_s4 + $0x50] sm:$0xf] %vm1031_vm2, %v1218_v31  ;;  %v728_v37 = vpop.f32.mrb[21].mxu1  ;;  %v1219_v38 = vpack.c.bf16 %v603_v35, %v603_v35 }
 0x113   :  { %v1250_v39 = vpack.c.bf16 %v728_v37, %v728_v37  ;;  %1055 = vst.msk [vmem:[%s2078_s4 + $0x5c] sm:$0xf] %vm1031_vm2, %v1221_v34  ;;  %v1511_v40 = vpop.f32.mrb[22].mxu1 }
 0x114   :  { %1086 = vst.msk [vmem:[%s2078_s4 + $0xd8] sm:$0xf] %vm1031_vm2, %v1252_v36  ;;  %v1253_v41 = vpack.c.bf16 %v1511_v40, %v1511_v40  ;;  %1053 = vst.msk [vmem:[%s2078_s4 + $0x54] sm:$0xf] %vm1031_vm2, %v1219_v38  ;;  %v731_v42 = vpop.f32.mrb[23].mxu1 }
 0x115   :  { %1084 = vst.msk [vmem:[%s2078_s4 + $0xd0] sm:$0xf] %vm1031_vm2, %v1250_v39  ;;  %v1251_v43 = vpack.c.bf16 %v731_v42, %v731_v42 }
 0x116   :  { %1087 = vst.msk [vmem:[%s2078_s4 + $0xdc] sm:$0xf] %vm1031_vm2, %v1253_v41 }
 0x117   :  { %1085 = vst.msk [vmem:[%s2078_s4 + $0xd4] sm:$0xf] %vm1031_vm2, %v1251_v43  ;;  %v1482_v44 = vpop.f32.mrb[24].mxu0 }
 0x118   :  { %v1224_v45 = vpack.c.bf16 %v1482_v44, %v1482_v44  ;;  %v616_v46 = vpop.f32.mrb[25].mxu0 }
 0x119   :  { %v1222_v47 = vpack.c.bf16 %v616_v46, %v616_v46  ;;  %v1483_v48 = vpop.f32.mrb[26].mxu0 }
 0x11a   :  { %1058 = vst.msk [vmem:[%s2078_s4 + $0x68] sm:$0xf] %vm1031_vm2, %v1224_v45  ;;  %v1514_v49 = vpop.f32.mrb[24].mxu1  ;;  %v1225_v50 = vpack.c.bf16 %v1483_v48, %v1483_v48  ;;  %v619_v51 = vpop.f32.mrb[27].mxu0 }
 0x11b   :  { %v1256_v52 = vpack.c.bf16 %v1514_v49, %v1514_v49  ;;  %1056 = vst.msk [vmem:[%s2078_s4 + $0x60] sm:$0xf] %vm1031_vm2, %v1222_v47  ;;  %v744_v53 = vpop.f32.mrb[25].mxu1  ;;  %v1223_v54 = vpack.c.bf16 %v619_v51, %v619_v51 }
 0x11c   :  { %v1254_v55 = vpack.c.bf16 %v744_v53, %v744_v53  ;;  %1059 = vst.msk [vmem:[%s2078_s4 + $0x6c] sm:$0xf] %vm1031_vm2, %v1225_v50  ;;  %v1515_v56 = vpop.f32.mrb[26].mxu1 }
 0x11d   :  { %1090 = vst.msk [vmem:[%s2078_s4 + $0xe8] sm:$0xf] %vm1031_vm2, %v1256_v52  ;;  %v1257_v57 = vpack.c.bf16 %v1515_v56, %v1515_v56  ;;  %1057 = vst.msk [vmem:[%s2078_s4 + $0x64] sm:$0xf] %vm1031_vm2, %v1223_v54  ;;  %v747_v58 = vpop.f32.mrb[27].mxu1 }
 0x11e   :  { %1088 = vst.msk [vmem:[%s2078_s4 + $0xe0] sm:$0xf] %vm1031_vm2, %v1254_v55  ;;  %v1255_v59 = vpack.c.bf16 %v747_v58, %v747_v58 }
 0x11f   :  { %1091 = vst.msk [vmem:[%s2078_s4 + $0xec] sm:$0xf] %vm1031_vm2, %v1257_v57 }
 0x120   :  { %1089 = vst.msk [vmem:[%s2078_s4 + $0xe4] sm:$0xf] %vm1031_vm2, %v1255_v59  ;;  %v1486_v60 = vpop.f32.mrb[28].mxu0 }
 0x121   :  { %v1228_v61 = vpack.c.bf16 %v1486_v60, %v1486_v60  ;;  %v632_v62 = vpop.f32.mrb[29].mxu0 }
 0x122   :  { %v1226_v63 = vpack.c.bf16 %v632_v62, %v632_v62  ;;  %v1487_v0 = vpop.f32.mrb[30].mxu0 }
 0x123   :  { %1062 = vst.msk [vmem:[%s2078_s4 + $0x78] sm:$0xf] %vm1031_vm2, %v1228_v61  ;;  %v1518_v1 = vpop.f32.mrb[28].mxu1  ;;  %v1229_v3 = vpack.c.bf16 %v1487_v0, %v1487_v0  ;;  %v635_v4 = vpop.f32.mrb[31].mxu0 }
 0x124   :  { %v1260_v5 = vpack.c.bf16 %v1518_v1, %v1518_v1  ;;  %1060 = vst.msk [vmem:[%s2078_s4 + $0x70] sm:$0xf] %vm1031_vm2, %v1226_v63  ;;  %v760_v6 = vpop.f32.mrb[29].mxu1  ;;  %v1227_v7 = vpack.c.bf16 %v635_v4, %v635_v4 }
 0x125   :  { %v1258_v9 = vpack.c.bf16 %v760_v6, %v760_v6  ;;  %1063 = vst.msk [vmem:[%s2078_s4 + $0x7c] sm:$0xf] %vm1031_vm2, %v1229_v3  ;;  %v1519_v10 = vpop.f32.mrb[30].mxu1 }
 0x126   :  { %1094 = vst.msk [vmem:[%s2078_s4 + $0xf8] sm:$0xf] %vm1031_vm2, %v1260_v5  ;;  %v1261_v11 = vpack.c.bf16 %v1519_v10, %v1519_v10  ;;  %1061 = vst.msk [vmem:[%s2078_s4 + $0x74] sm:$0xf] %vm1031_vm2, %v1227_v7  ;;  %v763_v12 = vpop.f32.mrb[31].mxu1 }
 0x127   :  { %1092 = vst.msk [vmem:[%s2078_s4 + $0xf0] sm:$0xf] %vm1031_vm2, %v1258_v9  ;;  %v1259_v13 = vpack.c.bf16 %v763_v12, %v763_v12 }
 0x128   :  { %1095 = vst.msk [vmem:[%s2078_s4 + $0xfc] sm:$0xf] %vm1031_vm2, %v1261_v11 }
 0x129   :  { %1093 = vst.msk [vmem:[%s2078_s4 + $0xf4] sm:$0xf] %vm1031_vm2, %v1259_v13 }

// kernel: tpu_custom_call.1
= control target key start
LH: loop header
LB: loop body
LE: loop exit
PB: predicated region body
PF: predicated region fallthrough
CT: control target
= control target key end

     0   :  { %vm482_vm0 = vcmask 1043456   ;;  %vm385_vm1 = vcmask 64512   ;;  %vm1031_vm2 = vcmask 27648   ;;  %s2074_s3 = inlined_call_operand.vmem [shape: bf16[8,4], index: 3, kind: input, shape index: {}]   ;;  %s2075_s0 = inlined_call_operand.vmem [shape: bf16[512,8], index: 0, kind: input, shape index: {}]   ;;  %s2076_s1 = inlined_call_operand.vmem [shape: f32[1,8], index: 1, kind: input, shape index: {}]   ;;  %s2077_s2 = inlined_call_operand.vmem [shape: f32[1,8], index: 2, kind: input, shape index: {}]   ;;  %s2078_s4 = inlined_call_operand.vmem [shape: bf16[512,4], index: 4, kind: output, shape index: {}]  }
   0x1   :  { %v384_v0 = vld [vmem:[%s2074_s3] sm:$0xf]  ;;  %v1390_v7 = vld [vmem:[%s2075_s0 + $0x8] sm:$0xff]   ;;  %v1391_v30 = vld [vmem:[%s2075_s0 + $0x10] sm:$0xff]  }
   0x2   :  { %v1263_v1 = vld [vmem:[%s2075_s0] sm:$0xff]   ;;  %1522 = vmatprep.subr.msk.bf16.mxu0 %vm482_vm0, %v384_v0  ;;  %1523 = vmatprep.subr.msk.bf16.mxu1 %vm482_vm0, %v384_v0  ;;  %v484_v3 = vsel %vm482_vm0, %v384_v0, 0  ;;  %v1268_v11 = vunpack.c.l.bf16 %v1390_v7  ;;  %v1269_v12 = vunpack.c.h.bf16 %v1390_v7  ;;  %v1406_v13 = vld [vmem:[%s2075_s0 + $0x88] sm:$0xff]   ;;  %v1407_v35 = vld [vmem:[%s2075_s0 + $0x90] sm:$0xff]   ;;  %v1272_v44 = vunpack.c.l.bf16 %v1391_v30 }
   0x3   :  { %v1558_v2 = vld [vmem:[%s2076_s1] ss:$0 sm:$0xff]  ;;  %v1264_v4 = vunpack.c.l.bf16 %v1263_v1  ;;  %v1265_v5 = vunpack.c.h.bf16 %v1263_v1  ;;  %1455 = vmatpush3.bf16.msra.mxu0 %v484_v3  ;;  %1521 = vmatpush3.bf16.msra.mxu1 %v484_v3  ;;  %v1332_v16 = vunpack.c.l.bf16 %v1406_v13  ;;  %v1333_v17 = vunpack.c.h.bf16 %v1406_v13  ;;  %v1392_v40 = vld [vmem:[%s2075_s0 + $0x18] sm:$0xff]  }
   0x4   :  { %v1405_v6 = vld [vmem:[%s2075_s0 + $0x80] sm:$0xff]   ;;  %v155_v20 = vmul.f32 %v1268_v11, %v1558_v2  ;;  %v156_v21 = vmul.f32 %v1269_v12, %v1558_v2  ;;  %v1408_v45 = vld [vmem:[%s2075_s0 + $0x98] sm:$0xff]   ;;  %v1273_v48 = vunpack.c.h.bf16 %v1391_v30  ;;  %v1336_v49 = vunpack.c.l.bf16 %v1407_v35 }
   0x5   :  { %v1569_v8 = vld [vmem:[%s2077_s2] ss:$0 sm:$0xff]  ;;  %v1328_v9 = vunpack.c.l.bf16 %v1405_v6  ;;  %v1329_v10 = vunpack.c.h.bf16 %v1405_v6  ;;  %v153_v14 = vmul.f32 %v1264_v4, %v1558_v2  ;;  %v154_v15 = vmul.f32 %v1265_v5, %v1558_v2 }
   0x6   :  { %v187_v24 = vmul.f32 %v1332_v16, %v1558_v2  ;;  %v188_v25 = vmul.f32 %v1333_v17, %v1558_v2  ;;  %v226_v28 = vadd.f32 %v1569_v8, %v155_v20  ;;  %v227_v29 = vadd.f32 %v1569_v8, %v156_v21  ;;  %v1393_v3 = vld [vmem:[%s2075_s0 + $0x20] sm:$0xff]  }
   0x7   :  { %v185_v18 = vmul.f32 %v1328_v9, %v1558_v2  ;;  %v186_v19 = vmul.f32 %v1329_v10, %v1558_v2  ;;  %v224_v22 = vadd.f32 %v1569_v8, %v153_v14  ;;  %v225_v23 = vadd.f32 %v1569_v8, %v154_v15  ;;  %v1409_v13 = vld [vmem:[%s2075_s0 + $0xa0] sm:$0xff]  }
   0x8   :  { %v258_v33 = vadd.f32 %v1569_v8, %v187_v24  ;;  %v259_v34 = vadd.f32 %v1569_v8, %v188_v25  ;;  %v290_v38 = vmax.f32 %v226_v28, 0.0  ;;  %v291_v39 = vmax.f32 %v227_v29, 0.0 }
   0x9   :  { %v256_v26 = vadd.f32 %v1569_v8, %v185_v18  ;;  %v257_v27 = vadd.f32 %v1569_v8, %v186_v19  ;;  %v288_v31 = vmax.f32 %v224_v22, 0.0  ;;  %v289_v32 = vmax.f32 %v225_v23, 0.0  ;;  %v1394_v18 = vld [vmem:[%s2075_s0 + $0x28] sm:$0xff]  }
   0xa   :  { %v322_v42 = vmax.f32 %v258_v33, 0.0  ;;  %v323_v43 = vmax.f32 %v259_v34, 0.0  ;;  %v353_v47 = vpack.c.bf16 %v291_v39, %v290_v38  ;;  %v157_v51 = vmul.f32 %v1272_v44, %v1558_v2 }
   0xb   :  { %v320_v36 = vmax.f32 %v256_v26, 0.0  ;;  %v321_v37 = vmax.f32 %v257_v27, 0.0  ;;  %v352_v41 = vpack.c.bf16 %v289_v32, %v288_v31  ;;  %v1337_v52 = vunpack.c.h.bf16 %v1407_v35  ;;  %v1410_v27 = vld [vmem:[%s2075_s0 + $0xa8] sm:$0xff]  }
   0xc   :  { %v369_v50 = vpack.c.bf16 %v323_v43, %v322_v42  ;;  %v1276_v53 = vunpack.c.l.bf16 %v1392_v40  ;;  %v158_v54 = vmul.f32 %v1273_v48, %v1558_v2  ;;  %v189_v55 = vmul.f32 %v1336_v49, %v1558_v2 }
   0xd   :  { %v368_v46 = vpack.c.bf16 %v321_v37, %v320_v36  ;;  %1456 = vmatprep.mubr.msk.bf16.mxu0 %vm385_vm1, %v352_v41  ;;  %v1277_v56 = vunpack.c.h.bf16 %v1392_v40  ;;  %v1340_v57 = vunpack.c.l.bf16 %v1408_v45  ;;  %v228_v58 = vadd.f32 %v1569_v8, %v157_v51  ;;  %v1395_v40 = vld [vmem:[%s2075_s0 + $0x30] sm:$0xff]  }
   0xe   :  { %1457 = vmatmul.mubr.msk.bf16.vlgmr.msra.gmra.mrb[0].mxu0 %vm385_vm1, %v353_v47  ;;  %v190_v59 = vmul.f32 %v1337_v52, %v1558_v2  ;;  %v159_v60 = vmul.f32 %v1276_v53, %v1558_v2  ;;  %v1341_v61 = vunpack.c.h.bf16 %v1408_v45  ;;  %v229_v62 = vadd.f32 %v1569_v8, %v158_v54  ;;  %v1411_v53 = vld [vmem:[%s2075_s0 + $0xb0] sm:$0xff]  }
   0xf   :  { %1488 = vmatprep.mubr.msk.bf16.mxu1 %vm385_vm1, %v368_v46  ;;  %v260_v63 = vadd.f32 %v1569_v8, %v189_v55  ;;  %v160_v0 = vmul.f32 %v1277_v56, %v1558_v2  ;;  %v191_v1 = vmul.f32 %v1340_v57, %v1558_v2  ;;  %v292_v4 = vmax.f32 %v228_v58, 0.0 }
  0x10   :  { %1489 = vmatmul.mubr.msk.bf16.vlgmr.msra.gmra.mrb[0].mxu1 %vm385_vm1, %v369_v50  ;;  %v261_v5 = vadd.f32 %v1569_v8, %v190_v59  ;;  %v230_v6 = vadd.f32 %v1569_v8, %v159_v60  ;;  %v192_v7 = vmul.f32 %v1341_v61, %v1558_v2  ;;  %v293_v9 = vmax.f32 %v229_v62, 0.0  ;;  %v1396_v62 = vld [vmem:[%s2075_s0 + $0x38] sm:$0xff]  }
  0x11   :  { %v324_v10 = vmax.f32 %v260_v63, 0.0  ;;  %v231_v11 = vadd.f32 %v1569_v8, %v160_v0  ;;  %v262_v12 = vadd.f32 %v1569_v8, %v191_v1  ;;  %v1280_v17 = vunpack.c.l.bf16 %v1393_v3 }
  0x12   :  { %v325_v14 = vmax.f32 %v261_v5, 0.0  ;;  %v294_v15 = vmax.f32 %v230_v6, 0.0  ;;  %v263_v16 = vadd.f32 %v1569_v8, %v192_v7  ;;  %v354_v19 = vpack.c.bf16 %v293_v9, %v292_v4  ;;  %v1412_v4 = vld [vmem:[%s2075_s0 + $0xb8] sm:$0xff]  }
  0x13   :  { %v295_v20 = vmax.f32 %v231_v11, 0.0  ;;  %v326_v21 = vmax.f32 %v262_v12, 0.0  ;;  %v1281_v22 = vunpack.c.h.bf16 %v1393_v3  ;;  %v161_v25 = vmul.f32 %v1280_v17, %v1558_v2 }
  0x14   :  { %v370_v23 = vpack.c.bf16 %v325_v14, %v324_v10  ;;  %v327_v24 = vmax.f32 %v263_v16, 0.0  ;;  %v1344_v26 = vunpack.c.l.bf16 %v1409_v13  ;;  %1460 = vmatprep.mubr.msk.bf16.mxu0 %vm385_vm1, %v354_v19  ;;  %v1345_v30 = vunpack.c.h.bf16 %v1409_v13  ;;  %v1397_v14 = vld [vmem:[%s2075_s0 + $0x40] sm:$0xff]  }
  0x15   :  { %v355_v28 = vpack.c.bf16 %v295_v20, %v294_v15  ;;  %v162_v29 = vmul.f32 %v1281_v22, %v1558_v2  ;;  %v1284_v31 = vunpack.c.l.bf16 %v1394_v18  ;;  %v232_v33 = vadd.f32 %v1569_v8, %v161_v25 }
  0x16   :  { %1492 = vmatprep.mubr.msk.bf16.mxu1 %vm385_vm1, %v370_v23  ;;  %v371_v32 = vpack.c.bf16 %v327_v24, %v326_v21  ;;  %v193_v34 = vmul.f32 %v1344_v26, %v1558_v2  ;;  %v1285_v35 = vunpack.c.h.bf16 %v1394_v18  ;;  %v194_v37 = vmul.f32 %v1345_v30, %v1558_v2 }
  0x17   :  { %1461 = vmatmul.mubr.msk.bf16.gmra.mrb[4].mxu0 %vm385_vm1, %v355_v28  ;;  %v233_v36 = vadd.f32 %v1569_v8, %v162_v29  ;;  %v163_v38 = vmul.f32 %v1284_v31, %v1558_v2  ;;  %v1348_v39 = vunpack.c.l.bf16 %v1410_v27  ;;  %v296_v41 = vmax.f32 %v232_v33, 0.0  ;;  %v1413_v31 = vld [vmem:[%s2075_s0 + $0xc0] sm:$0xff]  }
  0x18   :  { %1493 = vmatmul.mubr.msk.bf16.gmra.mrb[4].mxu1 %vm385_vm1, %v371_v32  ;;  %v264_v42 = vadd.f32 %v1569_v8, %v193_v34  ;;  %v164_v43 = vmul.f32 %v1285_v35, %v1558_v2  ;;  %v1349_v44 = vunpack.c.h.bf16 %v1410_v27  ;;  %v265_v46 = vadd.f32 %v1569_v8, %v194_v37 }
  0x19   :  { %v297_v45 = vmax.f32 %v233_v36, 0.0  ;;  %v234_v47 = vadd.f32 %v1569_v8, %v163_v38  ;;  %v195_v48 = vmul.f32 %v1348_v39, %v1558_v2  ;;  %v1288_v52 = vunpack.c.l.bf16 %v1395_v40  ;;  %v1398_v36 = vld [vmem:[%s2075_s0 + $0x48] sm:$0xff]  }
  0x1a   :  { %v328_v49 = vmax.f32 %v264_v42, 0.0  ;;  %v235_v50 = vadd.f32 %v1569_v8, %v164_v43  ;;  %v196_v51 = vmul.f32 %v1349_v44, %v1558_v2  ;;  %v329_v55 = vmax.f32 %v265_v46, 0.0 }
  0x1b   :  { %v356_v54 = vpack.c.bf16 %v297_v45, %v296_v41  ;;  %v298_v56 = vmax.f32 %v234_v47, 0.0  ;;  %v266_v57 = vadd.f32 %v1569_v8, %v195_v48  ;;  %v1289_v60 = vunpack.c.h.bf16 %v1395_v40  ;;  %v1414_v45 = vld [vmem:[%s2075_s0 + $0xc8] sm:$0xff]  }
  0x1c   :  { %v299_v58 = vmax.f32 %v235_v50, 0.0  ;;  %v267_v59 = vadd.f32 %v1569_v8, %v196_v51  ;;  %v165_v61 = vmul.f32 %v1288_v52, %v1558_v2  ;;  %v372_v63 = vpack.c.bf16 %v329_v55, %v328_v49 }
  0x1d   :  { %1464 = vmatprep.mubr.msk.bf16.mxu0 %vm385_vm1, %v356_v54  ;;  %v330_v0 = vmax.f32 %v266_v57, 0.0  ;;  %v1352_v1 = vunpack.c.l.bf16 %v1411_v53  ;;  %v1353_v3 = vunpack.c.h.bf16 %v1411_v53  ;;  %v166_v7 = vmul.f32 %v1289_v60, %v1558_v2 }
  0x1e   :  { %v357_v5 = vpack.c.bf16 %v299_v58, %v298_v56  ;;  %v331_v6 = vmax.f32 %v267_v59, 0.0  ;;  %v236_v9 = vadd.f32 %v1569_v8, %v165_v61  ;;  %1496 = vmatprep.mubr.msk.bf16.mxu1 %vm385_vm1, %v372_v63  ;;  %v1292_v12 = vunpack.c.l.bf16 %v1396_v62  ;;  %v1399_v58 = vld [vmem:[%s2075_s0 + $0x50] sm:$0xff]  }
  0x1f   :  { %v197_v10 = vmul.f32 %v1352_v1, %v1558_v2  ;;  %v198_v11 = vmul.f32 %v1353_v3, %v1558_v2  ;;  %v1293_v13 = vunpack.c.h.bf16 %v1396_v62  ;;  %v237_v16 = vadd.f32 %v1569_v8, %v166_v7 }
  0x20   :  { %1465 = vmatmul.mubr.msk.bf16.gmra.mrb[8].mxu0 %vm385_vm1, %v357_v5  ;;  %v373_v15 = vpack.c.bf16 %v331_v6, %v330_v0  ;;  %v300_v17 = vmax.f32 %v236_v9, 0.0  ;;  %v1356_v18 = vunpack.c.l.bf16 %v1412_v4  ;;  %v167_v21 = vmul.f32 %v1292_v12, %v1558_v2 }
  0x21   :  { %v268_v19 = vadd.f32 %v1569_v8, %v197_v10  ;;  %v269_v20 = vadd.f32 %v1569_v8, %v198_v11  ;;  %v168_v22 = vmul.f32 %v1293_v13, %v1558_v2  ;;  %v301_v23 = vmax.f32 %v237_v16, 0.0 }
  0x22   :  { %1497 = vmatmul.mubr.msk.bf16.gmra.mrb[8].mxu1 %vm385_vm1, %v373_v15  ;;  %v1357_v24 = vunpack.c.h.bf16 %v1412_v4  ;;  %v199_v25 = vmul.f32 %v1356_v18, %v1558_v2  ;;  %v1296_v26 = vunpack.c.l.bf16 %v1397_v14  ;;  %v238_v29 = vadd.f32 %v1569_v8, %v167_v21  ;;  %v1415_v4 = vld [vmem:[%s2075_s0 + $0xd0] sm:$0xff]   ;;  %v1400_v18 = vld [vmem:[%s2075_s0 + $0x58] sm:$0xff]  }
  0x23   :  { %v332_v27 = vmax.f32 %v268_v19, 0.0  ;;  %v333_v28 = vmax.f32 %v269_v20, 0.0  ;;  %v239_v30 = vadd.f32 %v1569_v8, %v168_v22  ;;  %v358_v32 = vpack.c.bf16 %v301_v23, %v300_v17  ;;  %v1416_v23 = vld [vmem:[%s2075_s0 + $0xd8] sm:$0xff]  }
  0x24   :  { %v200_v33 = vmul.f32 %v1357_v24, %v1558_v2  ;;  %v270_v34 = vadd.f32 %v1569_v8, %v199_v25  ;;  %v1297_v35 = vunpack.c.h.bf16 %v1397_v14  ;;  %v302_v38 = vmax.f32 %v238_v29, 0.0 }
  0x25   :  { %v374_v37 = vpack.c.bf16 %v333_v28, %v332_v27  ;;  %v303_v39 = vmax.f32 %v239_v30, 0.0  ;;  %v169_v40 = vmul.f32 %v1296_v26, %v1558_v2  ;;  %1468 = vmatprep.mubr.msk.bf16.mxu0 %vm385_vm1, %v358_v32  ;;  %v1360_v44 = vunpack.c.l.bf16 %v1413_v31 }
  0x26   :  { %v271_v41 = vadd.f32 %v1569_v8, %v200_v33  ;;  %v334_v42 = vmax.f32 %v270_v34, 0.0  ;;  %v170_v43 = vmul.f32 %v1297_v35, %v1558_v2  ;;  %v1361_v48 = vunpack.c.h.bf16 %v1413_v31 }
  0x27   :  { %1500 = vmatprep.mubr.msk.bf16.mxu1 %vm385_vm1, %v374_v37  ;;  %v359_v46 = vpack.c.bf16 %v303_v39, %v302_v38  ;;  %v240_v47 = vadd.f32 %v1569_v8, %v169_v40  ;;  %v1300_v49 = vunpack.c.l.bf16 %v1398_v36  ;;  %v201_v52 = vmul.f32 %v1360_v44, %v1558_v2 }
  0x28   :  { %v335_v50 = vmax.f32 %v271_v41, 0.0  ;;  %v241_v51 = vadd.f32 %v1569_v8, %v170_v43  ;;  %v1301_v53 = vunpack.c.h.bf16 %v1398_v36  ;;  %v202_v55 = vmul.f32 %v1361_v48, %v1558_v2  ;;  %v1401_v36 = vld [vmem:[%s2075_s0 + $0x60] sm:$0xff]  }
  0x29   :  { %1469 = vmatmul.mubr.msk.bf16.gmra.mrb[12].mxu0 %vm385_vm1, %v359_v46  ;;  %v304_v54 = vmax.f32 %v240_v47, 0.0  ;;  %v171_v56 = vmul.f32 %v1300_v49, %v1558_v2  ;;  %v1364_v57 = vunpack.c.l.bf16 %v1414_v45  ;;  %v272_v61 = vadd.f32 %v1569_v8, %v201_v52  ;;  %v1417_v49 = vld [vmem:[%s2075_s0 + $0xe0] sm:$0xff]  }
  0x2a   :  { %v375_v59 = vpack.c.bf16 %v335_v50, %v334_v42  ;;  %v305_v60 = vmax.f32 %v241_v51, 0.0  ;;  %v172_v62 = vmul.f32 %v1301_v53, %v1558_v2  ;;  %v273_v63 = vadd.f32 %v1569_v8, %v202_v55 }
  0x2b   :  { %v242_v0 = vadd.f32 %v1569_v8, %v171_v56  ;;  %v1365_v1 = vunpack.c.h.bf16 %v1414_v45  ;;  %v203_v3 = vmul.f32 %v1364_v57, %v1558_v2  ;;  %v336_v6 = vmax.f32 %v272_v61, 0.0 }
  0x2c   :  { %1501 = vmatmul.mubr.msk.bf16.gmra.mrb[12].mxu1 %vm385_vm1, %v375_v59  ;;  %v360_v5 = vpack.c.bf16 %v305_v60, %v304_v54  ;;  %v243_v7 = vadd.f32 %v1569_v8, %v172_v62  ;;  %v1304_v9 = vunpack.c.l.bf16 %v1399_v58  ;;  %v337_v10 = vmax.f32 %v273_v63, 0.0  ;;  %v1402_v54 = vld [vmem:[%s2075_s0 + $0x68] sm:$0xff]  }
  0x2d   :  { %v306_v11 = vmax.f32 %v242_v0, 0.0  ;;  %v204_v12 = vmul.f32 %v1365_v1, %v1558_v2  ;;  %v274_v13 = vadd.f32 %v1569_v8, %v203_v3  ;;  %v1305_v15 = vunpack.c.h.bf16 %v1399_v58  ;;  %v1418_v63 = vld [vmem:[%s2075_s0 + $0xe8] sm:$0xff]  }
  0x2e   :  { %1472 = vmatprep.mubr.msk.bf16.mxu0 %vm385_vm1, %v360_v5  ;;  %v307_v14 = vmax.f32 %v243_v7, 0.0  ;;  %v173_v16 = vmul.f32 %v1304_v9, %v1558_v2  ;;  %v1368_v17 = vunpack.c.l.bf16 %v1415_v4  ;;  %v376_v19 = vpack.c.bf16 %v337_v10, %v336_v6 }
  0x2f   :  { %v275_v20 = vadd.f32 %v1569_v8, %v204_v12  ;;  %v338_v21 = vmax.f32 %v274_v13, 0.0  ;;  %v1369_v22 = vunpack.c.h.bf16 %v1415_v4  ;;  %v174_v25 = vmul.f32 %v1305_v15, %v1558_v2 }
  0x30   :  { %v361_v24 = vpack.c.bf16 %v307_v14, %v306_v11  ;;  %v244_v26 = vadd.f32 %v1569_v8, %v173_v16  ;;  %v205_v27 = vmul.f32 %v1368_v17, %v1558_v2  ;;  %1504 = vmatprep.mubr.msk.bf16.mxu1 %vm385_vm1, %v376_v19  ;;  %v1308_v30 = vunpack.c.l.bf16 %v1400_v18  ;;  %v1403_v14 = vld [vmem:[%s2075_s0 + $0x70] sm:$0xff]  }
  0x31   :  { %v339_v28 = vmax.f32 %v275_v20, 0.0  ;;  %v206_v29 = vmul.f32 %v1369_v22, %v1558_v2  ;;  %v1309_v31 = vunpack.c.h.bf16 %v1400_v18  ;;  %v245_v32 = vadd.f32 %v1569_v8, %v174_v25 }
  0x32   :  { %1473 = vmatmul.mubr.msk.bf16.gmra.mrb[16].mxu0 %vm385_vm1, %v361_v24  ;;  %v308_v33 = vmax.f32 %v244_v26, 0.0  ;;  %v276_v34 = vadd.f32 %v1569_v8, %v205_v27  ;;  %v1372_v35 = vunpack.c.l.bf16 %v1416_v23  ;;  %v175_v39 = vmul.f32 %v1308_v30, %v1558_v2 }
  0x33   :  { %v377_v37 = vpack.c.bf16 %v339_v28, %v338_v21  ;;  %v277_v38 = vadd.f32 %v1569_v8, %v206_v29  ;;  %v176_v40 = vmul.f32 %v1309_v31, %v1558_v2  ;;  %v309_v41 = vmax.f32 %v245_v32, 0.0 }
  0x34   :  { %v340_v42 = vmax.f32 %v276_v34, 0.0  ;;  %v1373_v43 = vunpack.c.h.bf16 %v1416_v23  ;;  %v207_v44 = vmul.f32 %v1372_v35, %v1558_v2  ;;  %v246_v46 = vadd.f32 %v1569_v8, %v175_v39  ;;  %v1419_v23 = vld [vmem:[%s2075_s0 + $0xf0] sm:$0xff]  }
  0x35   :  { %1505 = vmatmul.mubr.msk.bf16.gmra.mrb[16].mxu1 %vm385_vm1, %v377_v37  ;;  %v341_v45 = vmax.f32 %v277_v38, 0.0  ;;  %v247_v47 = vadd.f32 %v1569_v8, %v176_v40  ;;  %v1312_v48 = vunpack.c.l.bf16 %v1401_v36  ;;  %v362_v50 = vpack.c.bf16 %v309_v41, %v308_v33  ;;  %v1420_v41 = vld [vmem:[%s2075_s0 + $0xf8] sm:$0xff]  }
  0x36   :  { %v208_v51 = vmul.f32 %v1373_v43, %v1558_v2  ;;  %v278_v52 = vadd.f32 %v1569_v8, %v207_v44  ;;  %v1313_v53 = vunpack.c.h.bf16 %v1401_v36  ;;  %v310_v56 = vmax.f32 %v246_v46, 0.0  ;;  %v1404_v36 = vld [vmem:[%s2075_s0 + $0x78] sm:$0xff]  }
  0x37   :  { %v378_v55 = vpack.c.bf16 %v341_v45, %v340_v42  ;;  %v311_v57 = vmax.f32 %v247_v47, 0.0  ;;  %v177_v58 = vmul.f32 %v1312_v48, %v1558_v2  ;;  %1476 = vmatprep.mubr.msk.bf16.mxu0 %vm385_vm1, %v362_v50  ;;  %v1376_v62 = vunpack.c.l.bf16 %v1417_v49 }
  0x38   :  { %v279_v59 = vadd.f32 %v1569_v8, %v208_v51  ;;  %v342_v60 = vmax.f32 %v278_v52, 0.0  ;;  %v178_v61 = vmul.f32 %v1313_v53, %v1558_v2  ;;  %v1377_v3 = vunpack.c.h.bf16 %v1417_v49 }
  0x39   :  { %1508 = vmatprep.mubr.msk.bf16.mxu1 %vm385_vm1, %v378_v55  ;;  %v363_v0 = vpack.c.bf16 %v311_v57, %v310_v56  ;;  %v248_v1 = vadd.f32 %v1569_v8, %v177_v58  ;;  %v1316_v4 = vunpack.c.l.bf16 %v1402_v54  ;;  %v209_v7 = vmul.f32 %v1376_v62, %v1558_v2 }
  0x3a   :  { %v343_v5 = vmax.f32 %v279_v59, 0.0  ;;  %v249_v6 = vadd.f32 %v1569_v8, %v178_v61  ;;  %v1317_v9 = vunpack.c.h.bf16 %v1402_v54  ;;  %v210_v11 = vmul.f32 %v1377_v3, %v1558_v2 }
  0x3b   :  { %1477 = vmatmul.mubr.msk.bf16.gmra.mrb[20].mxu0 %vm385_vm1, %v363_v0  ;;  %v312_v10 = vmax.f32 %v248_v1, 0.0  ;;  %v179_v12 = vmul.f32 %v1316_v4, %v1558_v2  ;;  %v1380_v13 = vunpack.c.l.bf16 %v1418_v63  ;;  %v280_v17 = vadd.f32 %v1569_v8, %v209_v7 }
  0x3c   :  { %v379_v15 = vpack.c.bf16 %v343_v5, %v342_v60  ;;  %v313_v16 = vmax.f32 %v249_v6, 0.0  ;;  %v180_v18 = vmul.f32 %v1317_v9, %v1558_v2  ;;  %v281_v19 = vadd.f32 %v1569_v8, %v210_v11 }
  0x3d   :  { %v250_v20 = vadd.f32 %v1569_v8, %v179_v12  ;;  %v1381_v21 = vunpack.c.h.bf16 %v1418_v63  ;;  %v211_v22 = vmul.f32 %v1380_v13, %v1558_v2  ;;  %v344_v25 = vmax.f32 %v280_v17, 0.0 }
  0x3e   :  { %1509 = vmatmul.mubr.msk.bf16.gmra.mrb[20].mxu1 %vm385_vm1, %v379_v15  ;;  %v364_v24 = vpack.c.bf16 %v313_v16, %v312_v10  ;;  %v251_v26 = vadd.f32 %v1569_v8, %v180_v18  ;;  %v1320_v27 = vunpack.c.l.bf16 %v1403_v14  ;;  %v345_v28 = vmax.f32 %v281_v19, 0.0 }
  0x3f   :  { %v314_v29 = vmax.f32 %v250_v20, 0.0  ;;  %v212_v30 = vmul.f32 %v1381_v21, %v1558_v2  ;;  %v282_v31 = vadd.f32 %v1569_v8, %v211_v22  ;;  %v1321_v33 = vunpack.c.h.bf16 %v1403_v14 }
  0x40   :  { %1480 = vmatprep.mubr.msk.bf16.mxu0 %vm385_vm1, %v364_v24  ;;  %v315_v32 = vmax.f32 %v251_v26, 0.0  ;;  %v181_v34 = vmul.f32 %v1320_v27, %v1558_v2  ;;  %v1384_v35 = vunpack.c.l.bf16 %v1419_v23  ;;  %v380_v37 = vpack.c.bf16 %v345_v28, %v344_v25 }
  0x41   :  { %v283_v38 = vadd.f32 %v1569_v8, %v212_v30  ;;  %v346_v39 = vmax.f32 %v282_v31, 0.0  ;;  %v1385_v40 = vunpack.c.h.bf16 %v1419_v23  ;;  %v182_v43 = vmul.f32 %v1321_v33, %v1558_v2 }
  0x42   :  { %v365_v42 = vpack.c.bf16 %v315_v32, %v314_v29  ;;  %v252_v44 = vadd.f32 %v1569_v8, %v181_v34  ;;  %v213_v45 = vmul.f32 %v1384_v35, %v1558_v2  ;;  %1512 = vmatprep.mubr.msk.bf16.mxu1 %vm385_vm1, %v380_v37  ;;  %v1324_v48 = vunpack.c.l.bf16 %v1404_v36 }
  0x43   :  { %v347_v46 = vmax.f32 %v283_v38, 0.0  ;;  %v214_v47 = vmul.f32 %v1385_v40, %v1558_v2  ;;  %v1325_v49 = vunpack.c.h.bf16 %v1404_v36  ;;  %v253_v50 = vadd.f32 %v1569_v8, %v182_v43 }
  0x44   :  { %1481 = vmatmul.mubr.msk.bf16.gmra.mrb[24].mxu0 %vm385_vm1, %v365_v42  ;;  %v316_v51 = vmax.f32 %v252_v44, 0.0  ;;  %v284_v52 = vadd.f32 %v1569_v8, %v213_v45  ;;  %v1388_v53 = vunpack.c.l.bf16 %v1420_v41  ;;  %v183_v56 = vmul.f32 %v1324_v48, %v1558_v2 }
  0x45   :  { %v381_v54 = vpack.c.bf16 %v347_v46, %v346_v39  ;;  %v285_v55 = vadd.f32 %v1569_v8, %v214_v47  ;;  %v184_v57 = vmul.f32 %v1325_v49, %v1558_v2  ;;  %v317_v58 = vmax.f32 %v253_v50, 0.0 }
  0x46   :  { %v348_v59 = vmax.f32 %v284_v52, 0.0  ;;  %v1389_v60 = vunpack.c.h.bf16 %v1420_v41  ;;  %v215_v61 = vmul.f32 %v1388_v53, %v1558_v2  ;;  %v254_v63 = vadd.f32 %v1569_v8, %v183_v56 }
  0x47   :  { %1513 = vmatmul.mubr.msk.bf16.gmra.mrb[24].mxu1 %vm385_vm1, %v381_v54  ;;  %v349_v62 = vmax.f32 %v285_v55, 0.0  ;;  %v255_v0 = vadd.f32 %v1569_v8, %v184_v57  ;;  %v366_v1 = vpack.c.bf16 %v317_v58, %v316_v51 }
  0x48   :  { %v216_v3 = vmul.f32 %v1389_v60, %v1558_v2  ;;  %v286_v4 = vadd.f32 %v1569_v8, %v215_v61  ;;  %v318_v6 = vmax.f32 %v254_v63, 0.0 }
  0x49   :  { %v382_v5 = vpack.c.bf16 %v349_v62, %v348_v59  ;;  %v319_v7 = vmax.f32 %v255_v0, 0.0  ;;  %1484 = vmatprep.mubr.msk.bf16.mxu0 %vm385_vm1, %v366_v1 }
  0x4a   :  { %v287_v9 = vadd.f32 %v1569_v8, %v216_v3  ;;  %v350_v10 = vmax.f32 %v286_v4, 0.0 }
  0x4b   :  { %1516 = vmatprep.mubr.msk.bf16.mxu1 %vm385_vm1, %v382_v5  ;;  %v367_v11 = vpack.c.bf16 %v319_v7, %v318_v6 }
  0x4c   :  { %v351_v12 = vmax.f32 %v287_v9, 0.0 }
  0x4d   :  { %1485 = vmatmul.mubr.msk.bf16.gmra.mrb[28].mxu0 %vm385_vm1, %v367_v11 }
  0x4e   :  { %v383_v13 = vpack.c.bf16 %v351_v12, %v350_v10 }
  0x50   :  { %1517 = vmatmul.mubr.msk.bf16.gmra.mrb[28].mxu1 %vm385_vm1, %v383_v13 }
  0xe1   :  { %v1458_v2 = vpop.f32.mrb[0].mxu0 }
  0xe2   :  { %v1200_v14 = vpack.c.bf16 %v1458_v2, %v1458_v2  ;;  %v520_v16 = vpop.f32.mrb[1].mxu0 }
  0xe3   :  { %v1490_v15 = vpop.f32.mrb[0].mxu1  ;;  %v1198_v18 = vpack.c.bf16 %v520_v16, %v520_v16  ;;  %v1459_v20 = vpop.f32.mrb[2].mxu0 }
  0xe4   :  { %v1232_v17 = vpack.c.bf16 %v1490_v15, %v1490_v15  ;;  %v648_v19 = vpop.f32.mrb[1].mxu1  ;;  %1034 = vst.msk [vmem:[%s2078_s4 + $0x8] sm:$0xf] %vm1031_vm2, %v1200_v14  ;;  %v1201_v21 = vpack.c.bf16 %v1459_v20, %v1459_v20  ;;  %v523_v23 = vpop.f32.mrb[3].mxu0 }
  0xe5   :  { %v1230_v8 = vpack.c.bf16 %v648_v19, %v648_v19  ;;  %v1491_v22 = vpop.f32.mrb[2].mxu1  ;;  %1032 = vst.msk [vmem:[%s2078_s4] sm:$0xf] %vm1031_vm2, %v1198_v18  ;;  %v1199_v25 = vpack.c.bf16 %v523_v23, %v523_v23 }
  0xe6   :  { %1066 = vst.msk [vmem:[%s2078_s4 + $0x88] sm:$0xf] %vm1031_vm2, %v1232_v17  ;;  %v1233_v24 = vpack.c.bf16 %v1491_v22, %v1491_v22  ;;  %v651_v26 = vpop.f32.mrb[3].mxu1  ;;  %1035 = vst.msk [vmem:[%s2078_s4 + $0xc] sm:$0xf] %vm1031_vm2, %v1201_v21 }
  0xe7   :  { %1064 = vst.msk [vmem:[%s2078_s4 + $0x80] sm:$0xf] %vm1031_vm2, %v1230_v8  ;;  %v1231_v27 = vpack.c.bf16 %v651_v26, %v651_v26  ;;  %1033 = vst.msk [vmem:[%s2078_s4 + $0x4] sm:$0xf] %vm1031_vm2, %v1199_v25 }
  0xe8   :  { %1067 = vst.msk [vmem:[%s2078_s4 + $0x8c] sm:$0xf] %vm1031_vm2, %v1233_v24 }
  0xe9   :  { %1065 = vst.msk [vmem:[%s2078_s4 + $0x84] sm:$0xf] %vm1031_vm2, %v1231_v27 }
  0xea   :  { %v1462_v28 = vpop.f32.mrb[4].mxu0 }
  0xeb   :  { %v1204_v29 = vpack.c.bf16 %v1462_v28, %v1462_v28  ;;  %v1494_v30 = vpop.f32.mrb[4].mxu1  ;;  %v536_v31 = vpop.f32.mrb[5].mxu0 }
  0xec   :  { %v1236_v32 = vpack.c.bf16 %v1494_v30, %v1494_v30  ;;  %v1202_v33 = vpack.c.bf16 %v536_v31, %v536_v31  ;;  %v664_v34 = vpop.f32.mrb[5].mxu1  ;;  %v1463_v35 = vpop.f32.mrb[6].mxu0 }
  0xed   :  { %1038 = vst.msk [vmem:[%s2078_s4 + $0x18] sm:$0xf] %vm1031_vm2, %v1204_v29  ;;  %v1234_v36 = vpack.c.bf16 %v664_v34, %v664_v34  ;;  %v1205_v37 = vpack.c.bf16 %v1463_v35, %v1463_v35  ;;  %v1495_v38 = vpop.f32.mrb[6].mxu1  ;;  %v539_v39 = vpop.f32.mrb[7].mxu0 }
  0xee   :  { %1070 = vst.msk [vmem:[%s2078_s4 + $0x98] sm:$0xf] %vm1031_vm2, %v1236_v32  ;;  %1036 = vst.msk [vmem:[%s2078_s4 + $0x10] sm:$0xf] %vm1031_vm2, %v1202_v33  ;;  %v1237_v40 = vpack.c.bf16 %v1495_v38, %v1495_v38  ;;  %v1203_v41 = vpack.c.bf16 %v539_v39, %v539_v39  ;;  %v667_v42 = vpop.f32.mrb[7].mxu1 }
  0xef   :  { %1068 = vst.msk [vmem:[%s2078_s4 + $0x90] sm:$0xf] %vm1031_vm2, %v1234_v36  ;;  %1039 = vst.msk [vmem:[%s2078_s4 + $0x1c] sm:$0xf] %vm1031_vm2, %v1205_v37  ;;  %v1235_v43 = vpack.c.bf16 %v667_v42, %v667_v42 }
  0xf0   :  { %1071 = vst.msk [vmem:[%s2078_s4 + $0x9c] sm:$0xf] %vm1031_vm2, %v1237_v40  ;;  %1037 = vst.msk [vmem:[%s2078_s4 + $0x14] sm:$0xf] %vm1031_vm2, %v1203_v41 }
  0xf1   :  { %1069 = vst.msk [vmem:[%s2078_s4 + $0x94] sm:$0xf] %vm1031_vm2, %v1235_v43 }
  0xf3   :  { %v1466_v44 = vpop.f32.mrb[8].mxu0 }
  0xf4   :  { %v1208_v45 = vpack.c.bf16 %v1466_v44, %v1466_v44  ;;  %v552_v46 = vpop.f32.mrb[9].mxu0 }
  0xf5   :  { %v1498_v47 = vpop.f32.mrb[8].mxu1  ;;  %v1206_v48 = vpack.c.bf16 %v552_v46, %v552_v46  ;;  %v1467_v49 = vpop.f32.mrb[10].mxu0 }
  0xf6   :  { %1042 = vst.msk [vmem:[%s2078_s4 + $0x28] sm:$0xf] %vm1031_vm2, %v1208_v45  ;;  %v1240_v50 = vpack.c.bf16 %v1498_v47, %v1498_v47  ;;  %v680_v51 = vpop.f32.mrb[9].mxu1  ;;  %v1209_v52 = vpack.c.bf16 %v1467_v49, %v1467_v49  ;;  %v555_v53 = vpop.f32.mrb[11].mxu0 }
  0xf7   :  { %1040 = vst.msk [vmem:[%s2078_s4 + $0x20] sm:$0xf] %vm1031_vm2, %v1206_v48  ;;  %v1238_v54 = vpack.c.bf16 %v680_v51, %v680_v51  ;;  %v1499_v55 = vpop.f32.mrb[10].mxu1  ;;  %v1207_v56 = vpack.c.bf16 %v555_v53, %v555_v53 }
  0xf8   :  { %1074 = vst.msk [vmem:[%s2078_s4 + $0xa8] sm:$0xf] %vm1031_vm2, %v1240_v50  ;;  %1043 = vst.msk [vmem:[%s2078_s4 + $0x2c] sm:$0xf] %vm1031_vm2, %v1209_v52  ;;  %v1241_v57 = vpack.c.bf16 %v1499_v55, %v1499_v55  ;;  %v683_v58 = vpop.f32.mrb[11].mxu1 }
  0xf9   :  { %1072 = vst.msk [vmem:[%s2078_s4 + $0xa0] sm:$0xf] %vm1031_vm2, %v1238_v54  ;;  %1041 = vst.msk [vmem:[%s2078_s4 + $0x24] sm:$0xf] %vm1031_vm2, %v1207_v56  ;;  %v1239_v59 = vpack.c.bf16 %v683_v58, %v683_v58 }
  0xfa   :  { %1075 = vst.msk [vmem:[%s2078_s4 + $0xac] sm:$0xf] %vm1031_vm2, %v1241_v57 }
  0xfb   :  { %1073 = vst.msk [vmem:[%s2078_s4 + $0xa4] sm:$0xf] %vm1031_vm2, %v1239_v59 }
  0xfc   :  { %v1470_v60 = vpop.f32.mrb[12].mxu0 }
  0xfd   :  { %v1212_v61 = vpack.c.bf16 %v1470_v60, %v1470_v60  ;;  %v568_v62 = vpop.f32.mrb[13].mxu0 }
  0xfe   :  { %v1210_v63 = vpack.c.bf16 %v568_v62, %v568_v62  ;;  %v1471_v0 = vpop.f32.mrb[14].mxu0 }
  0xff   :  { %1046 = vst.msk [vmem:[%s2078_s4 + $0x38] sm:$0xf] %vm1031_vm2, %v1212_v61  ;;  %v1502_v1 = vpop.f32.mrb[12].mxu1  ;;  %v1213_v3 = vpack.c.bf16 %v1471_v0, %v1471_v0  ;;  %v571_v4 = vpop.f32.mrb[15].mxu0 }
 0x100   :  { %v1244_v5 = vpack.c.bf16 %v1502_v1, %v1502_v1  ;;  %1044 = vst.msk [vmem:[%s2078_s4 + $0x30] sm:$0xf] %vm1031_vm2, %v1210_v63  ;;  %v696_v6 = vpop.f32.mrb[13].mxu1  ;;  %v1211_v7 = vpack.c.bf16 %v571_v4, %v571_v4 }
 0x101   :  { %v1242_v9 = vpack.c.bf16 %v696_v6, %v696_v6  ;;  %1047 = vst.msk [vmem:[%s2078_s4 + $0x3c] sm:$0xf] %vm1031_vm2, %v1213_v3  ;;  %v1503_v10 = vpop.f32.mrb[14].mxu1 }
 0x102   :  { %1078 = vst.msk [vmem:[%s2078_s4 + $0xb8] sm:$0xf] %vm1031_vm2, %v1244_v5  ;;  %v1245_v11 = vpack.c.bf16 %v1503_v10, %v1503_v10  ;;  %1045 = vst.msk [vmem:[%s2078_s4 + $0x34] sm:$0xf] %vm1031_vm2, %v1211_v7  ;;  %v699_v12 = vpop.f32.mrb[15].mxu1 }
 0x103   :  { %1076 = vst.msk [vmem:[%s2078_s4 + $0xb0] sm:$0xf] %vm1031_vm2, %v1242_v9  ;;  %v1243_v13 = vpack.c.bf16 %v699_v12, %v699_v12 }
 0x104   :  { %1079 = vst.msk [vmem:[%s2078_s4 + $0xbc] sm:$0xf] %vm1031_vm2, %v1245_v11 }
 0x105   :  { %1077 = vst.msk [vmem:[%s2078_s4 + $0xb4] sm:$0xf] %vm1031_vm2, %v1243_v13  ;;  %v1474_v2 = vpop.f32.mrb[16].mxu0 }
 0x106   :  { %v1216_v14 = vpack.c.bf16 %v1474_v2, %v1474_v2  ;;  %v584_v15 = vpop.f32.mrb[17].mxu0 }
 0x107   :  { %v1214_v16 = vpack.c.bf16 %v584_v15, %v584_v15  ;;  %v1475_v17 = vpop.f32.mrb[18].mxu0 }
 0x108   :  { %1050 = vst.msk [vmem:[%s2078_s4 + $0x48] sm:$0xf] %vm1031_vm2, %v1216_v14  ;;  %v1506_v18 = vpop.f32.mrb[16].mxu1  ;;  %v1217_v19 = vpack.c.bf16 %v1475_v17, %v1475_v17  ;;  %v587_v20 = vpop.f32.mrb[19].mxu0 }
 0x109   :  { %v1248_v8 = vpack.c.bf16 %v1506_v18, %v1506_v18  ;;  %1048 = vst.msk [vmem:[%s2078_s4 + $0x40] sm:$0xf] %vm1031_vm2, %v1214_v16  ;;  %v712_v21 = vpop.f32.mrb[17].mxu1  ;;  %v1215_v22 = vpack.c.bf16 %v587_v20, %v587_v20 }
 0x10a   :  { %v1246_v23 = vpack.c.bf16 %v712_v21, %v712_v21  ;;  %1051 = vst.msk [vmem:[%s2078_s4 + $0x4c] sm:$0xf] %vm1031_vm2, %v1217_v19  ;;  %v1507_v24 = vpop.f32.mrb[18].mxu1 }
 0x10b   :  { %1082 = vst.msk [vmem:[%s2078_s4 + $0xc8] sm:$0xf] %vm1031_vm2, %v1248_v8  ;;  %v1249_v25 = vpack.c.bf16 %v1507_v24, %v1507_v24  ;;  %1049 = vst.msk [vmem:[%s2078_s4 + $0x44] sm:$0xf] %vm1031_vm2, %v1215_v22  ;;  %v715_v26 = vpop.f32.mrb[19].mxu1 }
 0x10c   :  { %1080 = vst.msk [vmem:[%s2078_s4 + $0xc0] sm:$0xf] %vm1031_vm2, %v1246_v23  ;;  %v1247_v27 = vpack.c.bf16 %v715_v26, %v715_v26 }
 0x10d   :  { %1083 = vst.msk [vmem:[%s2078_s4 + $0xcc] sm:$0xf] %vm1031_vm2, %v1249_v25 }
 0x10e   :  { %1081 = vst.msk [vmem:[%s2078_s4 + $0xc4] sm:$0xf] %vm1031_vm2, %v1247_v27  ;;  %v1478_v28 = vpop.f32.mrb[20].mxu0 }
 0x10f   :  { %v1220_v29 = vpack.c.bf16 %v1478_v28, %v1478_v28  ;;  %v600_v30 = vpop.f32.mrb[21].mxu0 }
 0x110   :  { %v1218_v31 = vpack.c.bf16 %v600_v30, %v600_v30  ;;  %v1479_v32 = vpop.f32.mrb[22].mxu0 }
 0x111   :  { %1054 = vst.msk [vmem:[%s2078_s4 + $0x58] sm:$0xf] %vm1031_vm2, %v1220_v29  ;;  %v1510_v33 = vpop.f32.mrb[20].mxu1  ;;  %v1221_v34 = vpack.c.bf16 %v1479_v32, %v1479_v32  ;;  %v603_v35 = vpop.f32.mrb[23].mxu0 }
 0x112   :  { %v1252_v36 = vpack.c.bf16 %v1510_v33, %v1510_v33  ;;  %1052 = vst.msk [vmem:[%s2078_s4 + $0x50] sm:$0xf] %vm1031_vm2, %v1218_v31  ;;  %v728_v37 = vpop.f32.mrb[21].mxu1  ;;  %v1219_v38 = vpack.c.bf16 %v603_v35, %v603_v35 }
 0x113   :  { %v1250_v39 = vpack.c.bf16 %v728_v37, %v728_v37  ;;  %1055 = vst.msk [vmem:[%s2078_s4 + $0x5c] sm:$0xf] %vm1031_vm2, %v1221_v34  ;;  %v1511_v40 = vpop.f32.mrb[22].mxu1 }
 0x114   :  { %1086 = vst.msk [vmem:[%s2078_s4 + $0xd8] sm:$0xf] %vm1031_vm2, %v1252_v36  ;;  %v1253_v41 = vpack.c.bf16 %v1511_v40, %v1511_v40  ;;  %1053 = vst.msk [vmem:[%s2078_s4 + $0x54] sm:$0xf] %vm1031_vm2, %v1219_v38  ;;  %v731_v42 = vpop.f32.mrb[23].mxu1 }
 0x115   :  { %1084 = vst.msk [vmem:[%s2078_s4 + $0xd0] sm:$0xf] %vm1031_vm2, %v1250_v39  ;;  %v1251_v43 = vpack.c.bf16 %v731_v42, %v731_v42 }
 0x116   :  { %1087 = vst.msk [vmem:[%s2078_s4 + $0xdc] sm:$0xf] %vm1031_vm2, %v1253_v41 }
 0x117   :  { %1085 = vst.msk [vmem:[%s2078_s4 + $0xd4] sm:$0xf] %vm1031_vm2, %v1251_v43  ;;  %v1482_v44 = vpop.f32.mrb[24].mxu0 }
 0x118   :  { %v1224_v45 = vpack.c.bf16 %v1482_v44, %v1482_v44  ;;  %v616_v46 = vpop.f32.mrb[25].mxu0 }
 0x119   :  { %v1222_v47 = vpack.c.bf16 %v616_v46, %v616_v46  ;;  %v1483_v48 = vpop.f32.mrb[26].mxu0 }
 0x11a   :  { %1058 = vst.msk [vmem:[%s2078_s4 + $0x68] sm:$0xf] %vm1031_vm2, %v1224_v45  ;;  %v1514_v49 = vpop.f32.mrb[24].mxu1  ;;  %v1225_v50 = vpack.c.bf16 %v1483_v48, %v1483_v48  ;;  %v619_v51 = vpop.f32.mrb[27].mxu0 }
 0x11b   :  { %v1256_v52 = vpack.c.bf16 %v1514_v49, %v1514_v49  ;;  %1056 = vst.msk [vmem:[%s2078_s4 + $0x60] sm:$0xf] %vm1031_vm2, %v1222_v47  ;;  %v744_v53 = vpop.f32.mrb[25].mxu1  ;;  %v1223_v54 = vpack.c.bf16 %v619_v51, %v619_v51 }
 0x11c   :  { %v1254_v55 = vpack.c.bf16 %v744_v53, %v744_v53  ;;  %1059 = vst.msk [vmem:[%s2078_s4 + $0x6c] sm:$0xf] %vm1031_vm2, %v1225_v50  ;;  %v1515_v56 = vpop.f32.mrb[26].mxu1 }
 0x11d   :  { %1090 = vst.msk [vmem:[%s2078_s4 + $0xe8] sm:$0xf] %vm1031_vm2, %v1256_v52  ;;  %v1257_v57 = vpack.c.bf16 %v1515_v56, %v1515_v56  ;;  %1057 = vst.msk [vmem:[%s2078_s4 + $0x64] sm:$0xf] %vm1031_vm2, %v1223_v54  ;;  %v747_v58 = vpop.f32.mrb[27].mxu1 }
 0x11e   :  { %1088 = vst.msk [vmem:[%s2078_s4 + $0xe0] sm:$0xf] %vm1031_vm2, %v1254_v55  ;;  %v1255_v59 = vpack.c.bf16 %v747_v58, %v747_v58 }
 0x11f   :  { %1091 = vst.msk [vmem:[%s2078_s4 + $0xec] sm:$0xf] %vm1031_vm2, %v1257_v57 }
 0x120   :  { %1089 = vst.msk [vmem:[%s2078_s4 + $0xe4] sm:$0xf] %vm1031_vm2, %v1255_v59  ;;  %v1486_v60 = vpop.f32.mrb[28].mxu0 }
 0x121   :  { %v1228_v61 = vpack.c.bf16 %v1486_v60, %v1486_v60  ;;  %v632_v62 = vpop.f32.mrb[29].mxu0 }
 0x122   :  { %v1226_v63 = vpack.c.bf16 %v632_v62, %v632_v62  ;;  %v1487_v0 = vpop.f32.mrb[30].mxu0 }
 0x123   :  { %1062 = vst.msk [vmem:[%s2078_s4 + $0x78] sm:$0xf] %vm1031_vm2, %v1228_v61  ;;  %v1518_v1 = vpop.f32.mrb[28].mxu1  ;;  %v1229_v3 = vpack.c.bf16 %v1487_v0, %v1487_v0  ;;  %v635_v4 = vpop.f32.mrb[31].mxu0 }
 0x124   :  { %v1260_v5 = vpack.c.bf16 %v1518_v1, %v1518_v1  ;;  %1060 = vst.msk [vmem:[%s2078_s4 + $0x70] sm:$0xf] %vm1031_vm2, %v1226_v63  ;;  %v760_v6 = vpop.f32.mrb[29].mxu1  ;;  %v1227_v7 = vpack.c.bf16 %v635_v4, %v635_v4 }
 0x125   :  { %v1258_v9 = vpack.c.bf16 %v760_v6, %v760_v6  ;;  %1063 = vst.msk [vmem:[%s2078_s4 + $0x7c] sm:$0xf] %vm1031_vm2, %v1229_v3  ;;  %v1519_v10 = vpop.f32.mrb[30].mxu1 }
 0x126   :  { %1094 = vst.msk [vmem:[%s2078_s4 + $0xf8] sm:$0xf] %vm1031_vm2, %v1260_v5  ;;  %v1261_v11 = vpack.c.bf16 %v1519_v10, %v1519_v10  ;;  %1061 = vst.msk [vmem:[%s2078_s4 + $0x74] sm:$0xf] %vm1031_vm2, %v1227_v7  ;;  %v763_v12 = vpop.f32.mrb[31].mxu1 }
 0x127   :  { %1092 = vst.msk [vmem:[%s2078_s4 + $0xf0] sm:$0xf] %vm1031_vm2, %v1258_v9  ;;  %v1259_v13 = vpack.c.bf16 %v763_v12, %v763_v12 }
 0x128   :  { %1095 = vst.msk [vmem:[%s2078_s4 + $0xfc] sm:$0xf] %vm1031_vm2, %v1261_v11 }
 0x129   :  { %1093 = vst.msk [vmem:[%s2078_s4 + $0xf4] sm:$0xf] %vm1031_vm2, %v1259_v13 }

</bundles_post_ra>
